<compile_context>
chip_gen: v7x
topology: tpu7x:2x2x1
jax: 0.10.0
libtpu: 0.0.40
codegen_flags: <defaults>
</compile_context>

<pallas_src>
import math
import numpy as np
import jax
import jax.numpy as jnp
from jax.experimental import pallas as pl
from jax.experimental.pallas import tpu as pltpu

_CHUNK = 8            # time steps per statically-unrolled inner loop / dense store
_MAX_TIME_TILE = 512  # cap on the per-grid-step time tile (bounds VMEM on v7x)


def _round_up(a, b):
    return (a + b - 1) // b * b


# ---------------------------------------------------------------------------
# Pallas kernels
# ---------------------------------------------------------------------------
def _srwm_kernel(x_ref, w_ref, sel_ref, o_ref, w_s):
    """Sequential SRWM recurrence for one batch element, all heads interleaved.

    x_ref  : (T, H*D)      inputs for this batch element / time tile
    w_ref  : (H, D, Wtot)  fused learned init [W_y|W_q|W_k|w_b|0-pad]  (resident)
    sel_ref: (4, Wtot)     constant selector: beta_lane = sigmoid(b4) @ sel (resident)
    o_ref  : (T, H*D)      per-step outputs y_t (computed with W_{t-1})
    w_s    : (H, D, Wtot)  fast weight carried across time tiles (re-init at t==0)
    """
    T, HD = x_ref.shape
    H, D, Wtot = w_ref.shape

    @pl.when(pl.program_id(1) == 0)
    def _():
        w_s[...] = w_ref[...]

    sel = sel_ref[...]
    dn = (((0,), (0,)), ((), ()))  # contract size-1 leading dims -> outer product

    def softmax_rows(v):
        # Exact reciprocal on purpose: approx error would compound through the
        # recurrence (review correctness concern).
        m = jnp.max(v, axis=-1, keepdims=True)
        e = jnp.exp(v - m)
        return e / jnp.sum(e, axis=-1, keepdims=True)

    def chunk(c, Ws):
        Ws = list(Ws)
        base = pl.multiple_of(c * _CHUNK, _CHUNK)
        x_blk = x_ref[pl.ds(base, _CHUNK), :]          # dense (_CHUNK, H*D) load
        rows = []
        for i in range(_CHUNK):                        # static unroll (LLO visibility)
            x_row = x_blk[i:i + 1, :]                  # (1, H*D)
            # H independent MXU pushes -> interleaved dependent chains.
            zs = [jnp.dot(x_row[:, h * D:(h + 1) * D], Ws[h],
                          preferred_element_type=jnp.float32)
                  for h in range(H)]                   # each (1, Wtot) = [y|q|k|b|pad]
            rows.append(jnp.concatenate([z[:, 0:D] for z in zs], axis=1))  # (1, H*D)
            Z = jnp.concatenate(zs, axis=0)            # (H, Wtot): batch nonlinearities
            qs = softmax_rows(Z[:, D:2 * D])           # (H, D)
            ks = softmax_rows(Z[:, 2 * D:3 * D])       # (H, D)
            # Tiny (H,4)@(4,Wtot) constant matmul replaces the old (Wtot,Wtot) gather.
            beta_lane = jnp.dot(jax.nn.sigmoid(Z[:, 3 * D:3 * D + 4]), sel,
                                preferred_element_type=jnp.float32)       # (H, Wtot)
            d = qs - ks
            new_Ws = []
            for h in range(H):
                dv = jnp.dot(d[h:h + 1, :], Ws[h],
                             preferred_element_type=jnp.float32)          # (1, Wtot)
                u = beta_lane[h:h + 1, :] * dv
                # TODO(synk): on v5e/v6e this K=1 MXU outer product could be an XLU
                # transpose + VPU broadcast-multiply; on v7x the MRB absorbs the add.
                upd = jax.lax.dot_general(ks[h:h + 1, :], u, dn,
                                          preferred_element_type=jnp.float32)
                new_Ws.append(Ws[h] + upd)             # pad lanes stay exactly zero
            Ws = new_Ws
        # One dense (_CHUNK, H*D) store per chunk (no per-step partial stores).
        o_ref[pl.ds(base, _CHUNK), :] = jnp.concatenate(rows, axis=0)
        return tuple(Ws)

    # Fast weight lives in registers across the whole time tile; w_s is read once
    # here and written once below (no per-step VMEM round trips).
    Ws0 = tuple(w_s[h] for h in range(H))
    Ws_fin = jax.lax.fori_loop(0, T // _CHUNK, chunk, Ws0)
    for h in range(H):
        w_s[h, :, :] = Ws_fin[h]


def _proj_ln_res_kernel(h_ref, s_ref, w_ref, g_ref, b_ref, o_ref):
    """out = LayerNorm(h) + srwm_out @ W_out   (dropout is identity in eval).

    h_ref : (R, in_dim)   s_ref : (R, H*D)   w_ref : (H*D, in_dim) bf16, resident
    g_ref / b_ref : (1, in_dim)              o_ref : (R, in_dim)
    """
    proj = jnp.dot(s_ref[...].astype(jnp.bfloat16), w_ref[...],
                   preferred_element_type=jnp.float32)
    hh = h_ref[...]
    mu = jnp.mean(hh, axis=-1, keepdims=True)
    var = jnp.mean(jnp.square(hh - mu), axis=-1, keepdims=True)
    ln = (hh - mu) * jax.lax.rsqrt(var + 1e-5)
    ln = ln * g_ref[...] + b_ref[...]
    o_ref[...] = (ln + proj).astype(o_ref.dtype)


# ---------------------------------------------------------------------------
# Wrapper (glue: reshapes/transposes/padding in plain JAX)
# ---------------------------------------------------------------------------
def srwm_layer_forward(h, params, num_head, dim_head,
                       use_input_softmax=False, time_tile=None):
    slen, bsz, in_dim = h.shape
    H, D = num_head, dim_head
    hd = H * D
    assert in_dim == hd
    Wtot = _round_up(3 * D + 4, 128)  # lane-dense fused width (D=16 -> 128)

    # Fused per-head initial fast weight: [W_y | W_q | W_k | w_b | zero pad].
    w_all = jnp.concatenate(
        [params["W_y"], params["W_q"], params["W_k"], params["w_b"],
         jnp.zeros((H, D, Wtot - (3 * D + 4)), jnp.float32)], axis=-1)   # (H, D, Wtot)

    # Constant beta-broadcast selector: sel[s, j] = 1 iff min(j // D, 3) == s.
    seg = np.minimum(np.arange(Wtot) // D, 3)
    sel = jnp.asarray((np.arange(4)[:, None] == seg[None, :]).astype(np.float32))

    # bsz-major working layout for both kernels (one transpose in, one out).
    h_bm = jnp.transpose(h, (1, 0, 2)).astype(jnp.float32)   # (bsz, slen, H*D)
    x = h_bm
    if use_input_softmax:
        x = jax.nn.softmax(x.reshape(bsz, slen, H, D), axis=-1).reshape(bsz, slen, hd)

    # Time tiling: bounds per-invocation VMEM (v7x: 64 MiB phys / 32 MiB scoped
    # default) and lets x/o tile DMAs pipeline under compute. Trailing zero-padded
    # steps run after all real steps, so their updates never affect real outputs.
    slen_c = _round_up(slen, _CHUNK)
    if time_tile is None:
        time_tile = slen_c if slen_c <= _MAX_TIME_TILE else _MAX_TIME_TILE
    assert time_tile % _CHUNK == 0
    slen_p = _round_up(slen, time_tile)
    if slen_p != slen:
        x = jnp.pad(x, ((0, 0), (0, slen_p - slen), (0, 0)))
    n_t = slen_p // time_tile

    srwm_out = pl.pallas_call(
        _srwm_kernel,
        out_shape=jax.ShapeDtypeStruct((bsz, slen_p, hd), jnp.float32),
        grid_spec=pltpu.PrefetchScalarGridSpec(
            num_scalar_prefetch=0,
            grid=(bsz, n_t),       # batch parallel (2-TC balance on v7x), time serial
            in_specs=[
                pl.BlockSpec((None, time_tile, hd), lambda b, t: (b, t, 0)),
                pl.BlockSpec((H, D, Wtot), lambda b, t: (0, 0, 0)),   # resident
                pl.BlockSpec((4, Wtot), lambda b, t: (0, 0)),         # resident
            ],
            out_specs=pl.BlockSpec((None, time_tile, hd), lambda b, t: (b, t, 0)),
            scratch_shapes=[pltpu.VMEM((H, D, Wtot), jnp.float32)],
        ),
        compiler_params=pltpu.CompilerParams(
            dimension_semantics=("parallel", "arbitrary")),
    )(x, w_all, sel)

    out2d = srwm_out[:, :slen, :].reshape(bsz * slen, hd)
    h2d = h_bm.reshape(bsz * slen, hd)     # original (pre-softmax) h for LN/residual

    # Epilogue: mem-bound; pick a big, padding-free row tile.
    n_rows = bsz * slen
    tile_r = _round_up(n_rows, 8) if n_rows <= 512 else 512
    n_rows_p = _round_up(n_rows, tile_r)
    if n_rows_p != n_rows:
        pad = n_rows_p - n_rows
        h2d = jnp.pad(h2d, ((0, pad), (0, 0)))
        out2d = jnp.pad(out2d, ((0, pad), (0, 0)))

    y2d = pl.pallas_call(
        _proj_ln_res_kernel,
        out_shape=jax.ShapeDtypeStruct((n_rows_p, in_dim), jnp.float32),
        grid_spec=pltpu.PrefetchScalarGridSpec(
            num_scalar_prefetch=0,
            grid=(n_rows_p // tile_r,),
            in_specs=[
                pl.BlockSpec((tile_r, in_dim), lambda i: (i, 0)),
                pl.BlockSpec((tile_r, hd), lambda i: (i, 0)),
                pl.BlockSpec((hd, in_dim), lambda i: (0, 0)),   # W_out resident (bf16)
                pl.BlockSpec((1, in_dim), lambda i: (0, 0)),
                pl.BlockSpec((1, in_dim), lambda i: (0, 0)),
            ],
            out_specs=pl.BlockSpec((tile_r, in_dim), lambda i: (i, 0)),
        ),
        compiler_params=pltpu.CompilerParams(dimension_semantics=("parallel",)),
    )(h2d, out2d, params["W_out"].astype(jnp.bfloat16),
      params["ln_gamma"], params["ln_beta"])

    y = y2d[:n_rows].reshape(bsz, slen, in_dim)
    return jnp.transpose(y, (1, 0, 2))     # back to (slen, bsz, in_dim)


# ---------------------------------------------------------------------------
# Pure-JAX reference (mirrors the PyTorch semantics) for a correctness check
# ---------------------------------------------------------------------------
def _srwm_reference(x, Wy0, Wq0, Wk0, wb0):
    B, H, L, D = x.shape
    out = jnp.zeros_like(x)
    for b in range(B):
        for hh in range(H):
            Wy, Wq, Wk, Wb = Wy0[hh], Wq0[hh], Wk0[hh], wb0[hh]
            for t in range(L):
                xt = x[b, hh, t]
                y = xt @ Wy
                q = xt @ Wq
                k = xt @ Wk
                beta = jax.nn.sigmoid(xt @ Wb)
                qs = jax.nn.softmax(q)
                ks = jax.nn.softmax(k)
                d = qs - ks
                Wy_n = Wy + beta[0] * jnp.outer(ks, d @ Wy)
                Wq_n = Wq + beta[1] * jnp.outer(ks, d @ Wq)
                Wk_n = Wk + beta[2] * jnp.outer(ks, d @ Wk)
                Wb_n = Wb + beta[3] * jnp.outer(ks, d @ Wb)
                Wy, Wq, Wk, Wb = Wy_n, Wq_n, Wk_n, Wb_n
                out = out.at[b, hh, t].set(y)
    return out


def _forward_reference(h, params, num_head, dim_head):
    slen, bsz, in_dim = h.shape
    x = h.reshape(slen, bsz, num_head, dim_head)
    x = jnp.transpose(x, (1, 2, 0, 3))
    o = _srwm_reference(x, params["W_y"], params["W_q"],
                        params["W_k"], params["w_b"])
    o = jnp.transpose(o, (0, 2, 1, 3)).reshape(bsz, slen, num_head * dim_head)
    o = jnp.transpose(o, (1, 0, 2))
    o = o @ params["W_out"]
    mu = h.mean(-1, keepdims=True)
    var = ((h - mu) ** 2).mean(-1, keepdims=True)
    ln = (h - mu) / jnp.sqrt(var + 1e-5)
    ln = ln * params["ln_gamma"].reshape(1, 1, -1) + \
        params["ln_beta"].reshape(1, 1, -1)
    return ln + o


# ---------------------------------------------------------------------------
def make_params(key, num_head, dim_head, in_dim, beta_init=-1.0):
    std = 1.0 / math.sqrt(dim_head)
    std_q = 0.01 / math.sqrt(dim_head)
    k1, k2, k3, k4, k5 = jax.random.split(key, 5)
    hd = num_head * dim_head
    lim = 1.0 / math.sqrt(hd)
    return {
        "W_y": std * jax.random.normal(k1, (num_head, dim_head, dim_head),
                                       jnp.float32),
        "W_q": std_q * jax.random.normal(k2, (num_head, dim_head, dim_head),
                                         jnp.float32),
        "W_k": std * jax.random.normal(k3, (num_head, dim_head, dim_head),
                                       jnp.float32),
        "w_b": beta_init + std * jax.random.normal(
            k4, (num_head, dim_head, 4), jnp.float32),
        # out_linear stored already transposed: (H*D, in_dim), out = x @ W_out
        "W_out": jax.random.uniform(k5, (hd, in_dim), jnp.float32,
                                    minval=-lim, maxval=lim),
        "ln_gamma": jnp.ones((1, in_dim), jnp.float32),
        "ln_beta": jnp.zeros((1, in_dim), jnp.float32),
    }


if __name__ == "__main__":
    num_head, dim_head = 2, 16
    in_dim = num_head * dim_head      # 32
    slen, bsz = 16, 2

    key = jax.random.PRNGKey(0)
    kp, kh = jax.random.split(key)
    params = make_params(kp, num_head, dim_head, in_dim, beta_init=-1.0)
    h = jax.random.normal(kh, (slen, bsz, in_dim), jnp.float32)

    ref = _forward_reference(h, params, num_head, dim_head)

    # Default (single time tile) and explicit 8-step time tiles (exercises the
    # fast-weight carry across time-grid steps through the VMEM scratch).
    out = jax.block_until_ready(srwm_layer_forward(h, params, num_head, dim_head))
    out_tiled = jax.block_until_ready(
        srwm_layer_forward(h, params, num_head, dim_head, time_tile=8))

    assert out.shape == (slen, bsz, in_dim)
    for o in (out, out_tiled):
        max_err = float(jnp.max(jnp.abs(o - ref)))
        mean_err = float(jnp.mean(jnp.abs(o - ref)))
        # Tolerance is dominated by the intentional bf16 cast in the epilogue matmul;
        # the recurrence itself runs in f32 with exact softmax reciprocals.
        assert max_err < 3e-2 and mean_err < 5e-3, \
            f"mismatch vs reference: max={max_err} mean={mean_err}"

    print("KERNEL_OK")
</pallas_src>

<mosaic_0001>
module attributes {stable_mosaic.version = 11 : i64} {
  func.func @_srwm_kernel(%arg0: i32, %arg1: i32, %arg2: memref<1x16x32xf32, #tpu.memory_space<vmem>>, %arg3: memref<2x16x128xf32, #tpu.memory_space<vmem>>, %arg4: memref<4x128xf32, #tpu.memory_space<vmem>>, %arg5: memref<1x16x32xf32, #tpu.memory_space<vmem>>, %arg6: memref<2x16x128xf32, #tpu.memory_space<vmem>>) attributes {dimension_semantics = [#tpu.dimension_semantics<parallel>, #tpu.dimension_semantics<arbitrary>], iteration_bounds = array<i64: 2, 1>, scalar_prefetch = 0 : i64, scratch_operands = 1 : i64, tpu.core_type = #tpu.core_type<tc>, window_params = [{transform_indices = @transform_0, window_bounds = array<i64: 1, 16, 32>}, {pipeline_mode = #tpu.pipeline_mode<synchronous>, transform_indices = @transform_1, window_bounds = array<i64: 2, 16, 128>}, {pipeline_mode = #tpu.pipeline_mode<synchronous>, transform_indices = @transform_2, window_bounds = array<i64: 4, 128>}, {transform_indices = @transform_3, window_bounds = array<i64: 1, 16, 32>}]} {
    %c0_i32 = arith.constant 0 : i32
    %0 = arith.cmpi eq, %arg1, %c0_i32 : i32
    %1 = arith.extui %0 : i1 to i32
    %c0_i32_0 = arith.constant 0 : i32
    %2 = arith.cmpi ne, %1, %c0_i32_0 : i32
    scf.if %2 {
      %c0_15 = arith.constant 0 : index
      %c0_16 = arith.constant 0 : index
      %c0_17 = arith.constant 0 : index
      %16 = vector.load %arg3[%c0_15, %c0_16, %c0_17] : memref<2x16x128xf32, #tpu.memory_space<vmem>>, vector<2x16x128xf32>
      %c0_18 = arith.constant 0 : index
      %c0_19 = arith.constant 0 : index
      %c0_20 = arith.constant 0 : index
      %17 = vector.load %arg6[%c0_18, %c0_19, %c0_20] : memref<2x16x128xf32, #tpu.memory_space<vmem>>, vector<2x16x128xf32>
      tpu.vector_store %arg6[%c0_18, %c0_19, %c0_20], %16 {strides = array<i32>} : memref<2x16x128xf32, #tpu.memory_space<vmem>>, vector<2x16x128xf32>,
    } else {
    }
    %c0 = arith.constant 0 : index
    %c0_1 = arith.constant 0 : index
    %3 = vector.load %arg4[%c0, %c0_1] : memref<4x128xf32, #tpu.memory_space<vmem>>, vector<4x128xf32>
    %c0_2 = arith.constant 0 : index
    %c0_3 = arith.constant 0 : index
    %c0_4 = arith.constant 0 : index
    %4 = vector.load %arg6[%c0_2, %c0_3, %c0_4] : memref<2x16x128xf32, #tpu.memory_space<vmem>>, vector<1x16x128xf32>
    %5 = vector.shape_cast %4 : vector<1x16x128xf32> to vector<16x128xf32>
    %c1 = arith.constant 1 : index
    %c0_5 = arith.constant 0 : index
    %c0_6 = arith.constant 0 : index
    %6 = vector.load %arg6[%c1, %c0_5, %c0_6] : memref<2x16x128xf32, #tpu.memory_space<vmem>>, vector<1x16x128xf32>
    %7 = vector.shape_cast %6 : vector<1x16x128xf32> to vector<16x128xf32>
    %c0_i32_7 = arith.constant 0 : i32
    %c2_i32 = arith.constant 2 : i32
    %8 = arith.addi %c0_i32_7, %c2_i32 : i32
    %c1_i32 = arith.constant 1 : i32
    %9:2 = scf.for %arg7 = %c0_i32_7 to %8 step %c1_i32 iter_args(%arg8 = %5, %arg9 = %7) -> (vector<16x128xf32>, vector<16x128xf32>)  : i32 {
      %c8_i32 = arith.constant 8 : i32
      %16 = arith.muli %arg7, %c8_i32 : i32
      %17 = tpu.assume_multiple %16, 8 : i32
      %c0_15 = arith.constant 0 : index
      %18 = arith.index_cast %17 : i32 to index
      %c0_16 = arith.constant 0 : index
      %19 = vector.load %arg2[%c0_15, %18, %c0_16] : memref<1x16x32xf32, #tpu.memory_space<vmem>>, vector<1x8x32xf32>
      %20 = vector.shape_cast %19 : vector<1x8x32xf32> to vector<8x32xf32>
      %21 = vector.extract_strided_slice %20 {offsets = [0, 0], sizes = [1, 32], strides = [1, 1]} : vector<8x32xf32> to vector<1x32xf32>
      %22 = vector.extract_strided_slice %21 {offsets = [0, 0], sizes = [1, 16], strides = [1, 1]} : vector<1x32xf32> to vector<1x16xf32>
      %cst = arith.constant dense<0.000000e+00> : vector<1x128xf32>
      %23 = tpu.matmul %22, %arg8, %cst {dimension_numbers = #tpu.dot_dimension_numbers<[1], [0], [0], [1], [0, 0, 1, 1], [], []>} : vector<1x16xf32>, vector<16x128xf32>, vector<1x128xf32> -> vector<1x128xf32>
      %24 = vector.extract_strided_slice %21 {offsets = [0, 16], sizes = [1, 16], strides = [1, 1]} : vector<1x32xf32> to vector<1x16xf32>
      %cst_17 = arith.constant dense<0.000000e+00> : vector<1x128xf32>
      %25 = tpu.matmul %24, %arg9, %cst_17 {dimension_numbers = #tpu.dot_dimension_numbers<[1], [0], [0], [1], [0, 0, 1, 1], [], []>} : vector<1x16xf32>, vector<16x128xf32>, vector<1x128xf32> -> vector<1x128xf32>
      %26 = vector.extract_strided_slice %23 {offsets = [0, 0], sizes = [1, 16], strides = [1, 1]} : vector<1x128xf32> to vector<1x16xf32>
      %27 = vector.extract_strided_slice %25 {offsets = [0, 0], sizes = [1, 16], strides = [1, 1]} : vector<1x128xf32> to vector<1x16xf32>
      %28 = tpu.concatenate %26, %27 in 1 : vector<1x16xf32>, vector<1x16xf32> -> vector<1x32xf32>
      %29 = tpu.concatenate %23, %25 in 0 : vector<1x128xf32>, vector<1x128xf32> -> vector<2x128xf32>
      %30 = vector.extract_strided_slice %29 {offsets = [0, 16], sizes = [2, 16], strides = [1, 1]} : vector<2x128xf32> to vector<2x16xf32>
      %cst_18 = arith.constant dense<0xFF800000> : vector<2xf32>
      %31 = vector.multi_reduction <maximumf>, %30, %cst_18 [1] : vector<2x16xf32> to vector<2xf32>
      %32 = vector.shape_cast %31 : vector<2xf32> to vector<2x1xf32>
      %33 = vector.broadcast %32 : vector<2x1xf32> to vector<2x16xf32>
      %34 = arith.subf %30, %33 : vector<2x16xf32>
      %35 = math.exp %34 : vector<2x16xf32>
      %cst_19 = arith.constant dense<0.000000e+00> : vector<2xf32>
      %36 = vector.multi_reduction <add>, %35, %cst_19 [1] : vector<2x16xf32> to vector<2xf32>
      %37 = vector.shape_cast %36 : vector<2xf32> to vector<2x1xf32>
      %38 = vector.broadcast %37 : vector<2x1xf32> to vector<2x16xf32>
      %39 = arith.divf %35, %38 : vector<2x16xf32>
      %40 = vector.extract_strided_slice %29 {offsets = [0, 32], sizes = [2, 16], strides = [1, 1]} : vector<2x128xf32> to vector<2x16xf32>
      %cst_20 = arith.constant dense<0xFF800000> : vector<2xf32>
      %41 = vector.multi_reduction <maximumf>, %40, %cst_20 [1] : vector<2x16xf32> to vector<2xf32>
      %42 = vector.shape_cast %41 : vector<2xf32> to vector<2x1xf32>
      %43 = vector.broadcast %42 : vector<2x1xf32> to vector<2x16xf32>
      %44 = arith.subf %40, %43 : vector<2x16xf32>
      %45 = math.exp %44 : vector<2x16xf32>
      %cst_21 = arith.constant dense<0.000000e+00> : vector<2xf32>
      %46 = vector.multi_reduction <add>, %45, %cst_21 [1] : vector<2x16xf32> to vector<2xf32>
      %47 = vector.shape_cast %46 : vector<2xf32> to vector<2x1xf32>
      %48 = vector.broadcast %47 : vector<2x1xf32> to vector<2x16xf32>
      %49 = arith.divf %45, %48 : vector<2x16xf32>
      %50 = vector.extract_strided_slice %29 {offsets = [0, 48], sizes = [2, 4], strides = [1, 1]} : vector<2x128xf32> to vector<2x4xf32>
      %51 = arith.negf %50 : vector<2x4xf32>
      %52 = math.exp %51 : vector<2x4xf32>
      %cst_22 = arith.constant 1.000000e+00 : f32
      %53 = vector.broadcast %cst_22 : f32 to vector<2x4xf32>
      %54 = arith.addf %53, %52 : vector<2x4xf32>
      %55 = arith.divf %53, %54 : vector<2x4xf32>
      %cst_23 = arith.constant dense<0.000000e+00> : vector<2x128xf32>
      %56 = tpu.matmul %55, %3, %cst_23 {dimension_numbers = #tpu.dot_dimension_numbers<[1], [0], [0], [1], [0, 0, 1, 1], [], []>} : vector<2x4xf32>, vector<4x128xf32>, vector<2x128xf32> -> vector<2x128xf32>
      %57 = arith.subf %39, %49 : vector<2x16xf32>
      %58 = vector.extract_strided_slice %57 {offsets = [0, 0], sizes = [1, 16], strides = [1, 1]} : vector<2x16xf32> to vector<1x16xf32>
      %cst_24 = arith.constant dense<0.000000e+00> : vector<1x128xf32>
      %59 = tpu.matmul %58, %arg8, %cst_24 {dimension_numbers = #tpu.dot_dimension_numbers<[1], [0], [0], [1], [0, 0, 1, 1], [], []>} : vector<1x16xf32>, vector<16x128xf32>, vector<1x128xf32> -> vector<1x128xf32>
      %60 = vector.extract_strided_slice %56 {offsets = [0, 0], sizes = [1, 128], strides = [1, 1]} : vector<2x128xf32> to vector<1x128xf32>
      %61 = arith.mulf %60, %59 : vector<1x128xf32>
      %62 = vector.extract_strided_slice %49 {offsets = [0, 0], sizes = [1, 16], strides = [1, 1]} : vector<2x16xf32> to vector<1x16xf32>
      %cst_25 = arith.constant dense<0.000000e+00> : vector<16x128xf32>
      %63 = tpu.matmul %62, %61, %cst_25 {dimension_numbers = #tpu.dot_dimension_numbers<[0], [0], [1], [1], [0, 1, 1, 1], [], []>} : vector<1x16xf32>, vector<1x128xf32>, vector<16x128xf32> -> vector<16x128xf32>
      %64 = arith.addf %arg8, %63 : vector<16x128xf32>
      %65 = vector.extract_strided_slice %57 {offsets = [1, 0], sizes = [1, 16], strides = [1, 1]} : vector<2x16xf32> to vector<1x16xf32>
      %cst_26 = arith.constant dense<0.000000e+00> : vector<1x128xf32>
      %66 = tpu.matmul %65, %arg9, %cst_26 {dimension_numbers = #tpu.dot_dimension_numbers<[1], [0], [0], [1], [0, 0, 1, 1], [], []>} : vector<1x16xf32>, vector<16x128xf32>, vector<1x128xf32> -> vector<1x128xf32>
      %67 = vector.extract_strided_slice %56 {offsets = [1, 0], sizes = [1, 128], strides = [1, 1]} : vector<2x128xf32> to vector<1x128xf32>
      %68 = arith.mulf %67, %66 : vector<1x128xf32>
      %69 = vector.extract_strided_slice %49 {offsets = [1, 0], sizes = [1, 16], strides = [1, 1]} : vector<2x16xf32> to vector<1x16xf32>
      %cst_27 = arith.constant dense<0.000000e+00> : vector<16x128xf32>
      %70 = tpu.matmul %69, %68, %cst_27 {dimension_numbers = #tpu.dot_dimension_numbers<[0], [0], [1], [1], [0, 1, 1, 1], [], []>} : vector<1x16xf32>, vector<1x128xf32>, vector<16x128xf32> -> vector<16x128xf32>
      %71 = arith.addf %arg9, %70 : vector<16x128xf32>
      %72 = vector.extract_strided_slice %20 {offsets = [1, 0], sizes = [1, 32], strides = [1, 1]} : vector<8x32xf32> to vector<1x32xf32>
      %73 = vector.extract_strided_slice %72 {offsets = [0, 0], sizes = [1, 16], strides = [1, 1]} : vector<1x32xf32> to vector<1x16xf32>
      %cst_28 = arith.constant dense<0.000000e+00> : vector<1x128xf32>
      %74 = tpu.matmul %73, %64, %cst_28 {dimension_numbers = #tpu.dot_dimension_numbers<[1], [0], [0], [1], [0, 0, 1, 1], [], []>} : vector<1x16xf32>, vector<16x128xf32>, vector<1x128xf32> -> vector<1x128xf32>
      %75 = vector.extract_strided_slice %72 {offsets = [0, 16], sizes = [1, 16], strides = [1, 1]} : vector<1x32xf32> to vector<1x16xf32>
      %cst_29 = arith.constant dense<0.000000e+00> : vector<1x128xf32>
      %76 = tpu.matmul %75, %71, %cst_29 {dimension_numbers = #tpu.dot_dimension_numbers<[1], [0], [0], [1], [0, 0, 1, 1], [], []>} : vector<1x16xf32>, vector<16x128xf32>, vector<1x128xf32> -> vector<1x128xf32>
      %77 = vector.extract_strided_slice %74 {offsets = [0, 0], sizes = [1, 16], strides = [1, 1]} : vector<1x128xf32> to vector<1x16xf32>
      %78 = vector.extract_strided_slice %76 {offsets = [0, 0], sizes = [1, 16], strides = [1, 1]} : vector<1x128xf32> to vector<1x16xf32>
      %79 = tpu.concatenate %77, %78 in 1 : vector<1x16xf32>, vector<1x16xf32> -> vector<1x32xf32>
      %80 = tpu.concatenate %74, %76 in 0 : vector<1x128xf32>, vector<1x128xf32> -> vector<2x128xf32>
      %81 = vector.extract_strided_slice %80 {offsets = [0, 16], sizes = [2, 16], strides = [1, 1]} : vector<2x128xf32> to vector<2x16xf32>
      %cst_30 = arith.constant dense<0xFF800000> : vector<2xf32>
      %82 = vector.multi_reduction <maximumf>, %81, %cst_30 [1] : vector<2x16xf32> to vector<2xf32>
      %83 = vector.shape_cast %82 : vector<2xf32> to vector<2x1xf32>
      %84 = vector.broadcast %83 : vector<2x1xf32> to vector<2x16xf32>
      %85 = arith.subf %81, %84 : vector<2x16xf32>
      %86 = math.exp %85 : vector<2x16xf32>
      %cst_31 = arith.constant dense<0.000000e+00> : vector<2xf32>
      %87 = vector.multi_reduction <add>, %86, %cst_31 [1] : vector<2x16xf32> to vector<2xf32>
      %88 = vector.shape_cast %87 : vector<2xf32> to vector<2x1xf32>
      %89 = vector.broadcast %88 : vector<2x1xf32> to vector<2x16xf32>
      %90 = arith.divf %86, %89 : vector<2x16xf32>
      %91 = vector.extract_strided_slice %80 {offsets = [0, 32], sizes = [2, 16], strides = [1, 1]} : vector<2x128xf32> to vector<2x16xf32>
      %cst_32 = arith.constant dense<0xFF800000> : vector<2xf32>
      %92 = vector.multi_reduction <maximumf>, %91, %cst_32 [1] : vector<2x16xf32> to vector<2xf32>
      %93 = vector.shape_cast %92 : vector<2xf32> to vector<2x1xf32>
      %94 = vector.broadcast %93 : vector<2x1xf32> to vector<2x16xf32>
      %95 = arith.subf %91, %94 : vector<2x16xf32>
      %96 = math.exp %95 : vector<2x16xf32>
      %cst_33 = arith.constant dense<0.000000e+00> : vector<2xf32>
      %97 = vector.multi_reduction <add>, %96, %cst_33 [1] : vector<2x16xf32> to vector<2xf32>
      %98 = vector.shape_cast %97 : vector<2xf32> to vector<2x1xf32>
      %99 = vector.broadcast %98 : vector<2x1xf32> to vector<2x16xf32>
      %100 = arith.divf %96, %99 : vector<2x16xf32>
      %101 = vector.extract_strided_slice %80 {offsets = [0, 48], sizes = [2, 4], strides = [1, 1]} : vector<2x128xf32> to vector<2x4xf32>
      %102 = arith.negf %101 : vector<2x4xf32>
      %103 = math.exp %102 : vector<2x4xf32>
      %cst_34 = arith.constant 1.000000e+00 : f32
      %104 = vector.broadcast %cst_34 : f32 to vector<2x4xf32>
      %105 = arith.addf %104, %103 : vector<2x4xf32>
      %106 = arith.divf %104, %105 : vector<2x4xf32>
      %cst_35 = arith.constant dense<0.000000e+00> : vector<2x128xf32>
      %107 = tpu.matmul %106, %3, %cst_35 {dimension_numbers = #tpu.dot_dimension_numbers<[1], [0], [0], [1], [0, 0, 1, 1], [], []>} : vector<2x4xf32>, vector<4x128xf32>, vector<2x128xf32> -> vector<2x128xf32>
      %108 = arith.subf %90, %100 : vector<2x16xf32>
      %109 = vector.extract_strided_slice %108 {offsets = [0, 0], sizes = [1, 16], strides = [1, 1]} : vector<2x16xf32> to vector<1x16xf32>
      %cst_36 = arith.constant dense<0.000000e+00> : vector<1x128xf32>
      %110 = tpu.matmul %109, %64, %cst_36 {dimension_numbers = #tpu.dot_dimension_numbers<[1], [0], [0], [1], [0, 0, 1, 1], [], []>} : vector<1x16xf32>, vector<16x128xf32>, vector<1x128xf32> -> vector<1x128xf32>
      %111 = vector.extract_strided_slice %107 {offsets = [0, 0], sizes = [1, 128], strides = [1, 1]} : vector<2x128xf32> to vector<1x128xf32>
      %112 = arith.mulf %111, %110 : vector<1x128xf32>
      %113 = vector.extract_strided_slice %100 {offsets = [0, 0], sizes = [1, 16], strides = [1, 1]} : vector<2x16xf32> to vector<1x16xf32>
      %cst_37 = arith.constant dense<0.000000e+00> : vector<16x128xf32>
      %114 = tpu.matmul %113, %112, %cst_37 {dimension_numbers = #tpu.dot_dimension_numbers<[0], [0], [1], [1], [0, 1, 1, 1], [], []>} : vector<1x16xf32>, vector<1x128xf32>, vector<16x128xf32> -> vector<16x128xf32>
      %115 = arith.addf %64, %114 : vector<16x128xf32>
      %116 = vector.extract_strided_slice %108 {offsets = [1, 0], sizes = [1, 16], strides = [1, 1]} : vector<2x16xf32> to vector<1x16xf32>
      %cst_38 = arith.constant dense<0.000000e+00> : vector<1x128xf32>
      %117 = tpu.matmul %116, %71, %cst_38 {dimension_numbers = #tpu.dot_dimension_numbers<[1], [0], [0], [1], [0, 0, 1, 1], [], []>} : vector<1x16xf32>, vector<16x128xf32>, vector<1x128xf32> -> vector<1x128xf32>
      %118 = vector.extract_strided_slice %107 {offsets = [1, 0], sizes = [1, 128], strides = [1, 1]} : vector<2x128xf32> to vector<1x128xf32>
      %119 = arith.mulf %118, %117 : vector<1x128xf32>
      %120 = vector.extract_strided_slice %100 {offsets = [1, 0], sizes = [1, 16], strides = [1, 1]} : vector<2x16xf32> to vector<1x16xf32>
      %cst_39 = arith.constant dense<0.000000e+00> : vector<16x128xf32>
      %121 = tpu.matmul %120, %119, %cst_39 {dimension_numbers = #tpu.dot_dimension_numbers<[0], [0], [1], [1], [0, 1, 1, 1], [], []>} : vector<1x16xf32>, vector<1x128xf32>, vector<16x128xf32> -> vector<16x128xf32>
      %122 = arith.addf %71, %121 : vector<16x128xf32>
      %123 = vector.extract_strided_slice %20 {offsets = [2, 0], sizes = [1, 32], strides = [1, 1]} : vector<8x32xf32> to vector<1x32xf32>
      %124 = vector.extract_strided_slice %123 {offsets = [0, 0], sizes = [1, 16], strides = [1, 1]} : vector<1x32xf32> to vector<1x16xf32>
      %cst_40 = arith.constant dense<0.000000e+00> : vector<1x128xf32>
      %125 = tpu.matmul %124, %115, %cst_40 {dimension_numbers = #tpu.dot_dimension_numbers<[1], [0], [0], [1], [0, 0, 1, 1], [], []>} : vector<1x16xf32>, vector<16x128xf32>, vector<1x128xf32> -> vector<1x128xf32>
      %126 = vector.extract_strided_slice %123 {offsets = [0, 16], sizes = [1, 16], strides = [1, 1]} : vector<1x32xf32> to vector<1x16xf32>
      %cst_41 = arith.constant dense<0.000000e+00> : vector<1x128xf32>
      %127 = tpu.matmul %126, %122, %cst_41 {dimension_numbers = #tpu.dot_dimension_numbers<[1], [0], [0], [1], [0, 0, 1, 1], [], []>} : vector<1x16xf32>, vector<16x128xf32>, vector<1x128xf32> -> vector<1x128xf32>
      %128 = vector.extract_strided_slice %125 {offsets = [0, 0], sizes = [1, 16], strides = [1, 1]} : vector<1x128xf32> to vector<1x16xf32>
      %129 = vector.extract_strided_slice %127 {offsets = [0, 0], sizes = [1, 16], strides = [1, 1]} : vector<1x128xf32> to vector<1x16xf32>
      %130 = tpu.concatenate %128, %129 in 1 : vector<1x16xf32>, vector<1x16xf32> -> vector<1x32xf32>
      %131 = tpu.concatenate %125, %127 in 0 : vector<1x128xf32>, vector<1x128xf32> -> vector<2x128xf32>
      %132 = vector.extract_strided_slice %131 {offsets = [0, 16], sizes = [2, 16], strides = [1, 1]} : vector<2x128xf32> to vector<2x16xf32>
      %cst_42 = arith.constant dense<0xFF800000> : vector<2xf32>
      %133 = vector.multi_reduction <maximumf>, %132, %cst_42 [1] : vector<2x16xf32> to vector<2xf32>
      %134 = vector.shape_cast %133 : vector<2xf32> to vector<2x1xf32>
      %135 = vector.broadcast %134 : vector<2x1xf32> to vector<2x16xf32>
      %136 = arith.subf %132, %135 : vector<2x16xf32>
      %137 = math.exp %136 : vector<2x16xf32>
      %cst_43 = arith.constant dense<0.000000e+00> : vector<2xf32>
      %138 = vector.multi_reduction <add>, %137, %cst_43 [1] : vector<2x16xf32> to vector<2xf32>
      %139 = vector.shape_cast %138 : vector<2xf32> to vector<2x1xf32>
      %140 = vector.broadcast %139 : vector<2x1xf32> to vector<2x16xf32>
      %141 = arith.divf %137, %140 : vector<2x16xf32>
      %142 = vector.extract_strided_slice %131 {offsets = [0, 32], sizes = [2, 16], strides = [1, 1]} : vector<2x128xf32> to vector<2x16xf32>
      %cst_44 = arith.constant dense<0xFF800000> : vector<2xf32>
      %143 = vector.multi_reduction <maximumf>, %142, %cst_44 [1] : vector<2x16xf32> to vector<2xf32>
      %144 = vector.shape_cast %143 : vector<2xf32> to vector<2x1xf32>
      %145 = vector.broadcast %144 : vector<2x1xf32> to vector<2x16xf32>
      %146 = arith.subf %142, %145 : vector<2x16xf32>
      %147 = math.exp %146 : vector<2x16xf32>
      %cst_45 = arith.constant dense<0.000000e+00> : vector<2xf32>
      %148 = vector.multi_reduction <add>, %147, %cst_45 [1] : vector<2x16xf32> to vector<2xf32>
      %149 = vector.shape_cast %148 : vector<2xf32> to vector<2x1xf32>
      %150 = vector.broadcast %149 : vector<2x1xf32> to vector<2x16xf32>
      %151 = arith.divf %147, %150 : vector<2x16xf32>
      %152 = vector.extract_strided_slice %131 {offsets = [0, 48], sizes = [2, 4], strides = [1, 1]} : vector<2x128xf32> to vector<2x4xf32>
      %153 = arith.negf %152 : vector<2x4xf32>
      %154 = math.exp %153 : vector<2x4xf32>
      %cst_46 = arith.constant 1.000000e+00 : f32
      %155 = vector.broadcast %cst_46 : f32 to vector<2x4xf32>
      %156 = arith.addf %155, %154 : vector<2x4xf32>
      %157 = arith.divf %155, %156 : vector<2x4xf32>
      %cst_47 = arith.constant dense<0.000000e+00> : vector<2x128xf32>
      %158 = tpu.matmul %157, %3, %cst_47 {dimension_numbers = #tpu.dot_dimension_numbers<[1], [0], [0], [1], [0, 0, 1, 1], [], []>} : vector<2x4xf32>, vector<4x128xf32>, vector<2x128xf32> -> vector<2x128xf32>
      %159 = arith.subf %141, %151 : vector<2x16xf32>
      %160 = vector.extract_strided_slice %159 {offsets = [0, 0], sizes = [1, 16], strides = [1, 1]} : vector<2x16xf32> to vector<1x16xf32>
      %cst_48 = arith.constant dense<0.000000e+00> : vector<1x128xf32>
      %161 = tpu.matmul %160, %115, %cst_48 {dimension_numbers = #tpu.dot_dimension_numbers<[1], [0], [0], [1], [0, 0, 1, 1], [], []>} : vector<1x16xf32>, vector<16x128xf32>, vector<1x128xf32> -> vector<1x128xf32>
      %162 = vector.extract_strided_slice %158 {offsets = [0, 0], sizes = [1, 128], strides = [1, 1]} : vector<2x128xf32> to vector<1x128xf32>
      %163 = arith.mulf %162, %161 : vector<1x128xf32>
      %164 = vector.extract_strided_slice %151 {offsets = [0, 0], sizes = [1, 16], strides = [1, 1]} : vector<2x16xf32> to vector<1x16xf32>
      %cst_49 = arith.constant dense<0.000000e+00> : vector<16x128xf32>
      %165 = tpu.matmul %164, %163, %cst_49 {dimension_numbers = #tpu.dot_dimension_numbers<[0], [0], [1], [1], [0, 1, 1, 1], [], []>} : vector<1x16xf32>, vector<1x128xf32>, vector<16x128xf32> -> vector<16x128xf32>
      %166 = arith.addf %115, %165 : vector<16x128xf32>
      %167 = vector.extract_strided_slice %159 {offsets = [1, 0], sizes = [1, 16], strides = [1, 1]} : vector<2x16xf32> to vector<1x16xf32>
      %cst_50 = arith.constant dense<0.000000e+00> : vector<1x128xf32>
      %168 = tpu.matmul %167, %122, %cst_50 {dimension_numbers = #tpu.dot_dimension_numbers<[1], [0], [0], [1], [0, 0, 1, 1], [], []>} : vector<1x16xf32>, vector<16x128xf32>, vector<1x128xf32> -> vector<1x128xf32>
      %169 = vector.extract_strided_slice %158 {offsets = [1, 0], sizes = [1, 128], strides = [1, 1]} : vector<2x128xf32> to vector<1x128xf32>
      %170 = arith.mulf %169, %168 : vector<1x128xf32>
      %171 = vector.extract_strided_slice %151 {offsets = [1, 0], sizes = [1, 16], strides = [1, 1]} : vector<2x16xf32> to vector<1x16xf32>
      %cst_51 = arith.constant dense<0.000000e+00> : vector<16x128xf32>
      %172 = tpu.matmul %171, %170, %cst_51 {dimension_numbers = #tpu.dot_dimension_numbers<[0], [0], [1], [1], [0, 1, 1, 1], [], []>} : vector<1x16xf32>, vector<1x128xf32>, vector<16x128xf32> -> vector<16x128xf32>
      %173 = arith.addf %122, %172 : vector<16x128xf32>
      %174 = vector.extract_strided_slice %20 {offsets = [3, 0], sizes = [1, 32], strides = [1, 1]} : vector<8x32xf32> to vector<1x32xf32>
      %175 = vector.extract_strided_slice %174 {offsets = [0, 0], sizes = [1, 16], strides = [1, 1]} : vector<1x32xf32> to vector<1x16xf32>
      %cst_52 = arith.constant dense<0.000000e+00> : vector<1x128xf32>
      %176 = tpu.matmul %175, %166, %cst_52 {dimension_numbers = #tpu.dot_dimension_numbers<[1], [0], [0], [1], [0, 0, 1, 1], [], []>} : vector<1x16xf32>, vector<16x128xf32>, vector<1x128xf32> -> vector<1x128xf32>
      %177 = vector.extract_strided_slice %174 {offsets = [0, 16], sizes = [1, 16], strides = [1, 1]} : vector<1x32xf32> to vector<1x16xf32>
      %cst_53 = arith.constant dense<0.000000e+00> : vector<1x128xf32>
      %178 = tpu.matmul %177, %173, %cst_53 {dimension_numbers = #tpu.dot_dimension_numbers<[1], [0], [0], [1], [0, 0, 1, 1], [], []>} : vector<1x16xf32>, vector<16x128xf32>, vector<1x128xf32> -> vector<1x128xf32>
      %179 = vector.extract_strided_slice %176 {offsets = [0, 0], sizes = [1, 16], strides = [1, 1]} : vector<1x128xf32> to vector<1x16xf32>
      %180 = vector.extract_strided_slice %178 {offsets = [0, 0], sizes = [1, 16], strides = [1, 1]} : vector<1x128xf32> to vector<1x16xf32>
      %181 = tpu.concatenate %179, %180 in 1 : vector<1x16xf32>, vector<1x16xf32> -> vector<1x32xf32>
      %182 = tpu.concatenate %176, %178 in 0 : vector<1x128xf32>, vector<1x128xf32> -> vector<2x128xf32>
      %183 = vector.extract_strided_slice %182 {offsets = [0, 16], sizes = [2, 16], strides = [1, 1]} : vector<2x128xf32> to vector<2x16xf32>
      %cst_54 = arith.constant dense<0xFF800000> : vector<2xf32>
      %184 = vector.multi_reduction <maximumf>, %183, %cst_54 [1] : vector<2x16xf32> to vector<2xf32>
      %185 = vector.shape_cast %184 : vector<2xf32> to vector<2x1xf32>
      %186 = vector.broadcast %185 : vector<2x1xf32> to vector<2x16xf32>
      %187 = arith.subf %183, %186 : vector<2x16xf32>
      %188 = math.exp %187 : vector<2x16xf32>
      %cst_55 = arith.constant dense<0.000000e+00> : vector<2xf32>
      %189 = vector.multi_reduction <add>, %188, %cst_55 [1] : vector<2x16xf32> to vector<2xf32>
      %190 = vector.shape_cast %189 : vector<2xf32> to vector<2x1xf32>
      %191 = vector.broadcast %190 : vector<2x1xf32> to vector<2x16xf32>
      %192 = arith.divf %188, %191 : vector<2x16xf32>
      %193 = vector.extract_strided_slice %182 {offsets = [0, 32], sizes = [2, 16], strides = [1, 1]} : vector<2x128xf32> to vector<2x16xf32>
      %cst_56 = arith.constant dense<0xFF800000> : vector<2xf32>
      %194 = vector.multi_reduction <maximumf>, %193, %cst_56 [1] : vector<2x16xf32> to vector<2xf32>
      %195 = vector.shape_cast %194 : vector<2xf32> to vector<2x1xf32>
      %196 = vector.broadcast %195 : vector<2x1xf32> to vector<2x16xf32>
      %197 = arith.subf %193, %196 : vector<2x16xf32>
      %198 = math.exp %197 : vector<2x16xf32>
      %cst_57 = arith.constant dense<0.000000e+00> : vector<2xf32>
      %199 = vector.multi_reduction <add>, %198, %cst_57 [1] : vector<2x16xf32> to vector<2xf32>
      %200 = vector.shape_cast %199 : vector<2xf32> to vector<2x1xf32>
      %201 = vector.broadcast %200 : vector<2x1xf32> to vector<2x16xf32>
      %202 = arith.divf %198, %201 : vector<2x16xf32>
      %203 = vector.extract_strided_slice %182 {offsets = [0, 48], sizes = [2, 4], strides = [1, 1]} : vector<2x128xf32> to vector<2x4xf32>
      %204 = arith.negf %203 : vector<2x4xf32>
      %205 = math.exp %204 : vector<2x4xf32>
      %cst_58 = arith.constant 1.000000e+00 : f32
      %206 = vector.broadcast %cst_58 : f32 to vector<2x4xf32>
      %207 = arith.addf %206, %205 : vector<2x4xf32>
      %208 = arith.divf %206, %207 : vector<2x4xf32>
      %cst_59 = arith.constant dense<0.000000e+00> : vector<2x128xf32>
      %209 = tpu.matmul %208, %3, %cst_59 {dimension_numbers = #tpu.dot_dimension_numbers<[1], [0], [0], [1], [0, 0, 1, 1], [], []>} : vector<2x4xf32>, vector<4x128xf32>, vector<2x128xf32> -> vector<2x128xf32>
      %210 = arith.subf %192, %202 : vector<2x16xf32>
      %211 = vector.extract_strided_slice %210 {offsets = [0, 0], sizes = [1, 16], strides = [1, 1]} : vector<2x16xf32> to vector<1x16xf32>
      %cst_60 = arith.constant dense<0.000000e+00> : vector<1x128xf32>
      %212 = tpu.matmul %211, %166, %cst_60 {dimension_numbers = #tpu.dot_dimension_numbers<[1], [0], [0], [1], [0, 0, 1, 1], [], []>} : vector<1x16xf32>, vector<16x128xf32>, vector<1x128xf32> -> vector<1x128xf32>
      %213 = vector.extract_strided_slice %209 {offsets = [0, 0], sizes = [1, 128], strides = [1, 1]} : vector<2x128xf32> to vector<1x128xf32>
      %214 = arith.mulf %213, %212 : vector<1x128xf32>
      %215 = vector.extract_strided_slice %202 {offsets = [0, 0], sizes = [1, 16], strides = [1, 1]} : vector<2x16xf32> to vector<1x16xf32>
      %cst_61 = arith.constant dense<0.000000e+00> : vector<16x128xf32>
      %216 = tpu.matmul %215, %214, %cst_61 {dimension_numbers = #tpu.dot_dimension_numbers<[0], [0], [1], [1], [0, 1, 1, 1], [], []>} : vector<1x16xf32>, vector<1x128xf32>, vector<16x128xf32> -> vector<16x128xf32>
      %217 = arith.addf %166, %216 : vector<16x128xf32>
      %218 = vector.extract_strided_slice %210 {offsets = [1, 0], sizes = [1, 16], strides = [1, 1]} : vector<2x16xf32> to vector<1x16xf32>
      %cst_62 = arith.constant dense<0.000000e+00> : vector<1x128xf32>
      %219 = tpu.matmul %218, %173, %cst_62 {dimension_numbers = #tpu.dot_dimension_numbers<[1], [0], [0], [1], [0, 0, 1, 1], [], []>} : vector<1x16xf32>, vector<16x128xf32>, vector<1x128xf32> -> vector<1x128xf32>
      %220 = vector.extract_strided_slice %209 {offsets = [1, 0], sizes = [1, 128], strides = [1, 1]} : vector<2x128xf32> to vector<1x128xf32>
      %221 = arith.mulf %220, %219 : vector<1x128xf32>
      %222 = vector.extract_strided_slice %202 {offsets = [1, 0], sizes = [1, 16], strides = [1, 1]} : vector<2x16xf32> to vector<1x16xf32>
      %cst_63 = arith.constant dense<0.000000e+00> : vector<16x128xf32>
      %223 = tpu.matmul %222, %221, %cst_63 {dimension_numbers = #tpu.dot_dimension_numbers<[0], [0], [1], [1], [0, 1, 1, 1], [], []>} : vector<1x16xf32>, vector<1x128xf32>, vector<16x128xf32> -> vector<16x128xf32>
      %224 = arith.addf %173, %223 : vector<16x128xf32>
      %225 = vector.extract_strided_slice %20 {offsets = [4, 0], sizes = [1, 32], strides = [1, 1]} : vector<8x32xf32> to vector<1x32xf32>
      %226 = vector.extract_strided_slice %225 {offsets = [0, 0], sizes = [1, 16], strides = [1, 1]} : vector<1x32xf32> to vector<1x16xf32>
      %cst_64 = arith.constant dense<0.000000e+00> : vector<1x128xf32>
      %227 = tpu.matmul %226, %217, %cst_64 {dimension_numbers = #tpu.dot_dimension_numbers<[1], [0], [0], [1], [0, 0, 1, 1], [], []>} : vector<1x16xf32>, vector<16x128xf32>, vector<1x128xf32> -> vector<1x128xf32>
      %228 = vector.extract_strided_slice %225 {offsets = [0, 16], sizes = [1, 16], strides = [1, 1]} : vector<1x32xf32> to vector<1x16xf32>
      %cst_65 = arith.constant dense<0.000000e+00> : vector<1x128xf32>
      %229 = tpu.matmul %228, %224, %cst_65 {dimension_numbers = #tpu.dot_dimension_numbers<[1], [0], [0], [1], [0, 0, 1, 1], [], []>} : vector<1x16xf32>, vector<16x128xf32>, vector<1x128xf32> -> vector<1x128xf32>
      %230 = vector.extract_strided_slice %227 {offsets = [0, 0], sizes = [1, 16], strides = [1, 1]} : vector<1x128xf32> to vector<1x16xf32>
      %231 = vector.extract_strided_slice %229 {offsets = [0, 0], sizes = [1, 16], strides = [1, 1]} : vector<1x128xf32> to vector<1x16xf32>
      %232 = tpu.concatenate %230, %231 in 1 : vector<1x16xf32>, vector<1x16xf32> -> vector<1x32xf32>
      %233 = tpu.concatenate %227, %229 in 0 : vector<1x128xf32>, vector<1x128xf32> -> vector<2x128xf32>
      %234 = vector.extract_strided_slice %233 {offsets = [0, 16], sizes = [2, 16], strides = [1, 1]} : vector<2x128xf32> to vector<2x16xf32>
      %cst_66 = arith.constant dense<0xFF800000> : vector<2xf32>
      %235 = vector.multi_reduction <maximumf>, %234, %cst_66 [1] : vector<2x16xf32> to vector<2xf32>
      %236 = vector.shape_cast %235 : vector<2xf32> to vector<2x1xf32>
      %237 = vector.broadcast %236 : vector<2x1xf32> to vector<2x16xf32>
      %238 = arith.subf %234, %237 : vector<2x16xf32>
      %239 = math.exp %238 : vector<2x16xf32>
      %cst_67 = arith.constant dense<0.000000e+00> : vector<2xf32>
      %240 = vector.multi_reduction <add>, %239, %cst_67 [1] : vector<2x16xf32> to vector<2xf32>
      %241 = vector.shape_cast %240 : vector<2xf32> to vector<2x1xf32>
      %242 = vector.broadcast %241 : vector<2x1xf32> to vector<2x16xf32>
      %243 = arith.divf %239, %242 : vector<2x16xf32>
      %244 = vector.extract_strided_slice %233 {offsets = [0, 32], sizes = [2, 16], strides = [1, 1]} : vector<2x128xf32> to vector<2x16xf32>
      %cst_68 = arith.constant dense<0xFF800000> : vector<2xf32>
      %245 = vector.multi_reduction <maximumf>, %244, %cst_68 [1] : vector<2x16xf32> to vector<2xf32>
      %246 = vector.shape_cast %245 : vector<2xf32> to vector<2x1xf32>
      %247 = vector.broadcast %246 : vector<2x1xf32> to vector<2x16xf32>
      %248 = arith.subf %244, %247 : vector<2x16xf32>
      %249 = math.exp %248 : vector<2x16xf32>
      %cst_69 = arith.constant dense<0.000000e+00> : vector<2xf32>
      %250 = vector.multi_reduction <add>, %249, %cst_69 [1] : vector<2x16xf32> to vector<2xf32>
      %251 = vector.shape_cast %250 : vector<2xf32> to vector<2x1xf32>
      %252 = vector.broadcast %251 : vector<2x1xf32> to vector<2x16xf32>
      %253 = arith.divf %249, %252 : vector<2x16xf32>
      %254 = vector.extract_strided_slice %233 {offsets = [0, 48], sizes = [2, 4], strides = [1, 1]} : vector<2x128xf32> to vector<2x4xf32>
      %255 = arith.negf %254 : vector<2x4xf32>
      %256 = math.exp %255 : vector<2x4xf32>
      %cst_70 = arith.constant 1.000000e+00 : f32
      %257 = vector.broadcast %cst_70 : f32 to vector<2x4xf32>
      %258 = arith.addf %257, %256 : vector<2x4xf32>
      %259 = arith.divf %257, %258 : vector<2x4xf32>
      %cst_71 = arith.constant dense<0.000000e+00> : vector<2x128xf32>
      %260 = tpu.matmul %259, %3, %cst_71 {dimension_numbers = #tpu.dot_dimension_numbers<[1], [0], [0], [1], [0, 0, 1, 1], [], []>} : vector<2x4xf32>, vector<4x128xf32>, vector<2x128xf32> -> vector<2x128xf32>
      %261 = arith.subf %243, %253 : vector<2x16xf32>
      %262 = vector.extract_strided_slice %261 {offsets = [0, 0], sizes = [1, 16], strides = [1, 1]} : vector<2x16xf32> to vector<1x16xf32>
      %cst_72 = arith.constant dense<0.000000e+00> : vector<1x128xf32>
      %263 = tpu.matmul %262, %217, %cst_72 {dimension_numbers = #tpu.dot_dimension_numbers<[1], [0], [0], [1], [0, 0, 1, 1], [], []>} : vector<1x16xf32>, vector<16x128xf32>, vector<1x128xf32> -> vector<1x128xf32>
      %264 = vector.extract_strided_slice %260 {offsets = [0, 0], sizes = [1, 128], strides = [1, 1]} : vector<2x128xf32> to vector<1x128xf32>
      %265 = arith.mulf %264, %263 : vector<1x128xf32>
      %266 = vector.extract_strided_slice %253 {offsets = [0, 0], sizes = [1, 16], strides = [1, 1]} : vector<2x16xf32> to vector<1x16xf32>
      %cst_73 = arith.constant dense<0.000000e+00> : vector<16x128xf32>
      %267 = tpu.matmul %266, %265, %cst_73 {dimension_numbers = #tpu.dot_dimension_numbers<[0], [0], [1], [1], [0, 1, 1, 1], [], []>} : vector<1x16xf32>, vector<1x128xf32>, vector<16x128xf32> -> vector<16x128xf32>
      %268 = arith.addf %217, %267 : vector<16x128xf32>
      %269 = vector.extract_strided_slice %261 {offsets = [1, 0], sizes = [1, 16], strides = [1, 1]} : vector<2x16xf32> to vector<1x16xf32>
      %cst_74 = arith.constant dense<0.000000e+00> : vector<1x128xf32>
      %270 = tpu.matmul %269, %224, %cst_74 {dimension_numbers = #tpu.dot_dimension_numbers<[1], [0], [0], [1], [0, 0, 1, 1], [], []>} : vector<1x16xf32>, vector<16x128xf32>, vector<1x128xf32> -> vector<1x128xf32>
      %271 = vector.extract_strided_slice %260 {offsets = [1, 0], sizes = [1, 128], strides = [1, 1]} : vector<2x128xf32> to vector<1x128xf32>
      %272 = arith.mulf %271, %270 : vector<1x128xf32>
      %273 = vector.extract_strided_slice %253 {offsets = [1, 0], sizes = [1, 16], strides = [1, 1]} : vector<2x16xf32> to vector<1x16xf32>
      %cst_75 = arith.constant dense<0.000000e+00> : vector<16x128xf32>
      %274 = tpu.matmul %273, %272, %cst_75 {dimension_numbers = #tpu.dot_dimension_numbers<[0], [0], [1], [1], [0, 1, 1, 1], [], []>} : vector<1x16xf32>, vector<1x128xf32>, vector<16x128xf32> -> vector<16x128xf32>
      %275 = arith.addf %224, %274 : vector<16x128xf32>
      %276 = vector.extract_strided_slice %20 {offsets = [5, 0], sizes = [1, 32], strides = [1, 1]} : vector<8x32xf32> to vector<1x32xf32>
      %277 = vector.extract_strided_slice %276 {offsets = [0, 0], sizes = [1, 16], strides = [1, 1]} : vector<1x32xf32> to vector<1x16xf32>
      %cst_76 = arith.constant dense<0.000000e+00> : vector<1x128xf32>
      %278 = tpu.matmul %277, %268, %cst_76 {dimension_numbers = #tpu.dot_dimension_numbers<[1], [0], [0], [1], [0, 0, 1, 1], [], []>} : vector<1x16xf32>, vector<16x128xf32>, vector<1x128xf32> -> vector<1x128xf32>
      %279 = vector.extract_strided_slice %276 {offsets = [0, 16], sizes = [1, 16], strides = [1, 1]} : vector<1x32xf32> to vector<1x16xf32>
      %cst_77 = arith.constant dense<0.000000e+00> : vector<1x128xf32>
      %280 = tpu.matmul %279, %275, %cst_77 {dimension_numbers = #tpu.dot_dimension_numbers<[1], [0], [0], [1], [0, 0, 1, 1], [], []>} : vector<1x16xf32>, vector<16x128xf32>, vector<1x128xf32> -> vector<1x128xf32>
      %281 = vector.extract_strided_slice %278 {offsets = [0, 0], sizes = [1, 16], strides = [1, 1]} : vector<1x128xf32> to vector<1x16xf32>
      %282 = vector.extract_strided_slice %280 {offsets = [0, 0], sizes = [1, 16], strides = [1, 1]} : vector<1x128xf32> to vector<1x16xf32>
      %283 = tpu.concatenate %281, %282 in 1 : vector<1x16xf32>, vector<1x16xf32> -> vector<1x32xf32>
      %284 = tpu.concatenate %278, %280 in 0 : vector<1x128xf32>, vector<1x128xf32> -> vector<2x128xf32>
      %285 = vector.extract_strided_slice %284 {offsets = [0, 16], sizes = [2, 16], strides = [1, 1]} : vector<2x128xf32> to vector<2x16xf32>
      %cst_78 = arith.constant dense<0xFF800000> : vector<2xf32>
      %286 = vector.multi_reduction <maximumf>, %285, %cst_78 [1] : vector<2x16xf32> to vector<2xf32>
      %287 = vector.shape_cast %286 : vector<2xf32> to vector<2x1xf32>
      %288 = vector.broadcast %287 : vector<2x1xf32> to vector<2x16xf32>
      %289 = arith.subf %285, %288 : vector<2x16xf32>
      %290 = math.exp %289 : vector<2x16xf32>
      %cst_79 = arith.constant dense<0.000000e+00> : vector<2xf32>
      %291 = vector.multi_reduction <add>, %290, %cst_79 [1] : vector<2x16xf32> to vector<2xf32>
      %292 = vector.shape_cast %291 : vector<2xf32> to vector<2x1xf32>
      %293 = vector.broadcast %292 : vector<2x1xf32> to vector<2x16xf32>
      %294 = arith.divf %290, %293 : vector<2x16xf32>
      %295 = vector.extract_strided_slice %284 {offsets = [0, 32], sizes = [2, 16], strides = [1, 1]} : vector<2x128xf32> to vector<2x16xf32>
      %cst_80 = arith.constant dense<0xFF800000> : vector<2xf32>
      %296 = vector.multi_reduction <maximumf>, %295, %cst_80 [1] : vector<2x16xf32> to vector<2xf32>
      %297 = vector.shape_cast %296 : vector<2xf32> to vector<2x1xf32>
      %298 = vector.broadcast %297 : vector<2x1xf32> to vector<2x16xf32>
      %299 = arith.subf %295, %298 : vector<2x16xf32>
      %300 = math.exp %299 : vector<2x16xf32>
      %cst_81 = arith.constant dense<0.000000e+00> : vector<2xf32>
      %301 = vector.multi_reduction <add>, %300, %cst_81 [1] : vector<2x16xf32> to vector<2xf32>
      %302 = vector.shape_cast %301 : vector<2xf32> to vector<2x1xf32>
      %303 = vector.broadcast %302 : vector<2x1xf32> to vector<2x16xf32>
      %304 = arith.divf %300, %303 : vector<2x16xf32>
      %305 = vector.extract_strided_slice %284 {offsets = [0, 48], sizes = [2, 4], strides = [1, 1]} : vector<2x128xf32> to vector<2x4xf32>
      %306 = arith.negf %305 : vector<2x4xf32>
      %307 = math.exp %306 : vector<2x4xf32>
      %cst_82 = arith.constant 1.000000e+00 : f32
      %308 = vector.broadcast %cst_82 : f32 to vector<2x4xf32>
      %309 = arith.addf %308, %307 : vector<2x4xf32>
      %310 = arith.divf %308, %309 : vector<2x4xf32>
      %cst_83 = arith.constant dense<0.000000e+00> : vector<2x128xf32>
      %311 = tpu.matmul %310, %3, %cst_83 {dimension_numbers = #tpu.dot_dimension_numbers<[1], [0], [0], [1], [0, 0, 1, 1], [], []>} : vector<2x4xf32>, vector<4x128xf32>, vector<2x128xf32> -> vector<2x128xf32>
      %312 = arith.subf %294, %304 : vector<2x16xf32>
      %313 = vector.extract_strided_slice %312 {offsets = [0, 0], sizes = [1, 16], strides = [1, 1]} : vector<2x16xf32> to vector<1x16xf32>
      %cst_84 = arith.constant dense<0.000000e+00> : vector<1x128xf32>
      %314 = tpu.matmul %313, %268, %cst_84 {dimension_numbers = #tpu.dot_dimension_numbers<[1], [0], [0], [1], [0, 0, 1, 1], [], []>} : vector<1x16xf32>, vector<16x128xf32>, vector<1x128xf32> -> vector<1x128xf32>
      %315 = vector.extract_strided_slice %311 {offsets = [0, 0], sizes = [1, 128], strides = [1, 1]} : vector<2x128xf32> to vector<1x128xf32>
      %316 = arith.mulf %315, %314 : vector<1x128xf32>
      %317 = vector.extract_strided_slice %304 {offsets = [0, 0], sizes = [1, 16], strides = [1, 1]} : vector<2x16xf32> to vector<1x16xf32>
      %cst_85 = arith.constant dense<0.000000e+00> : vector<16x128xf32>
      %318 = tpu.matmul %317, %316, %cst_85 {dimension_numbers = #tpu.dot_dimension_numbers<[0], [0], [1], [1], [0, 1, 1, 1], [], []>} : vector<1x16xf32>, vector<1x128xf32>, vector<16x128xf32> -> vector<16x128xf32>
      %319 = arith.addf %268, %318 : vector<16x128xf32>
      %320 = vector.extract_strided_slice %312 {offsets = [1, 0], sizes = [1, 16], strides = [1, 1]} : vector<2x16xf32> to vector<1x16xf32>
      %cst_86 = arith.constant dense<0.000000e+00> : vector<1x128xf32>
      %321 = tpu.matmul %320, %275, %cst_86 {dimension_numbers = #tpu.dot_dimension_numbers<[1], [0], [0], [1], [0, 0, 1, 1], [], []>} : vector<1x16xf32>, vector<16x128xf32>, vector<1x128xf32> -> vector<1x128xf32>
      %322 = vector.extract_strided_slice %311 {offsets = [1, 0], sizes = [1, 128], strides = [1, 1]} : vector<2x128xf32> to vector<1x128xf32>
      %323 = arith.mulf %322, %321 : vector<1x128xf32>
      %324 = vector.extract_strided_slice %304 {offsets = [1, 0], sizes = [1, 16], strides = [1, 1]} : vector<2x16xf32> to vector<1x16xf32>
      %cst_87 = arith.constant dense<0.000000e+00> : vector<16x128xf32>
      %325 = tpu.matmul %324, %323, %cst_87 {dimension_numbers = #tpu.dot_dimension_numbers<[0], [0], [1], [1], [0, 1, 1, 1], [], []>} : vector<1x16xf32>, vector<1x128xf32>, vector<16x128xf32> -> vector<16x128xf32>
      %326 = arith.addf %275, %325 : vector<16x128xf32>
      %327 = vector.extract_strided_slice %20 {offsets = [6, 0], sizes = [1, 32], strides = [1, 1]} : vector<8x32xf32> to vector<1x32xf32>
      %328 = vector.extract_strided_slice %327 {offsets = [0, 0], sizes = [1, 16], strides = [1, 1]} : vector<1x32xf32> to vector<1x16xf32>
      %cst_88 = arith.constant dense<0.000000e+00> : vector<1x128xf32>
      %329 = tpu.matmul %328, %319, %cst_88 {dimension_numbers = #tpu.dot_dimension_numbers<[1], [0], [0], [1], [0, 0, 1, 1], [], []>} : vector<1x16xf32>, vector<16x128xf32>, vector<1x128xf32> -> vector<1x128xf32>
      %330 = vector.extract_strided_slice %327 {offsets = [0, 16], sizes = [1, 16], strides = [1, 1]} : vector<1x32xf32> to vector<1x16xf32>
      %cst_89 = arith.constant dense<0.000000e+00> : vector<1x128xf32>
      %331 = tpu.matmul %330, %326, %cst_89 {dimension_numbers = #tpu.dot_dimension_numbers<[1], [0], [0], [1], [0, 0, 1, 1], [], []>} : vector<1x16xf32>, vector<16x128xf32>, vector<1x128xf32> -> vector<1x128xf32>
      %332 = vector.extract_strided_slice %329 {offsets = [0, 0], sizes = [1, 16], strides = [1, 1]} : vector<1x128xf32> to vector<1x16xf32>
      %333 = vector.extract_strided_slice %331 {offsets = [0, 0], sizes = [1, 16], strides = [1, 1]} : vector<1x128xf32> to vector<1x16xf32>
      %334 = tpu.concatenate %332, %333 in 1 : vector<1x16xf32>, vector<1x16xf32> -> vector<1x32xf32>
      %335 = tpu.concatenate %329, %331 in 0 : vector<1x128xf32>, vector<1x128xf32> -> vector<2x128xf32>
      %336 = vector.extract_strided_slice %335 {offsets = [0, 16], sizes = [2, 16], strides = [1, 1]} : vector<2x128xf32> to vector<2x16xf32>
      %cst_90 = arith.constant dense<0xFF800000> : vector<2xf32>
      %337 = vector.multi_reduction <maximumf>, %336, %cst_90 [1] : vector<2x16xf32> to vector<2xf32>
      %338 = vector.shape_cast %337 : vector<2xf32> to vector<2x1xf32>
      %339 = vector.broadcast %338 : vector<2x1xf32> to vector<2x16xf32>
      %340 = arith.subf %336, %339 : vector<2x16xf32>
      %341 = math.exp %340 : vector<2x16xf32>
      %cst_91 = arith.constant dense<0.000000e+00> : vector<2xf32>
      %342 = vector.multi_reduction <add>, %341, %cst_91 [1] : vector<2x16xf32> to vector<2xf32>
      %343 = vector.shape_cast %342 : vector<2xf32> to vector<2x1xf32>
      %344 = vector.broadcast %343 : vector<2x1xf32> to vector<2x16xf32>
      %345 = arith.divf %341, %344 : vector<2x16xf32>
      %346 = vector.extract_strided_slice %335 {offsets = [0, 32], sizes = [2, 16], strides = [1, 1]} : vector<2x128xf32> to vector<2x16xf32>
      %cst_92 = arith.constant dense<0xFF800000> : vector<2xf32>
      %347 = vector.multi_reduction <maximumf>, %346, %cst_92 [1] : vector<2x16xf32> to vector<2xf32>
      %348 = vector.shape_cast %347 : vector<2xf32> to vector<2x1xf32>
      %349 = vector.broadcast %348 : vector<2x1xf32> to vector<2x16xf32>
      %350 = arith.subf %346, %349 : vector<2x16xf32>
      %351 = math.exp %350 : vector<2x16xf32>
      %cst_93 = arith.constant dense<0.000000e+00> : vector<2xf32>
      %352 = vector.multi_reduction <add>, %351, %cst_93 [1] : vector<2x16xf32> to vector<2xf32>
      %353 = vector.shape_cast %352 : vector<2xf32> to vector<2x1xf32>
      %354 = vector.broadcast %353 : vector<2x1xf32> to vector<2x16xf32>
      %355 = arith.divf %351, %354 : vector<2x16xf32>
      %356 = vector.extract_strided_slice %335 {offsets = [0, 48], sizes = [2, 4], strides = [1, 1]} : vector<2x128xf32> to vector<2x4xf32>
      %357 = arith.negf %356 : vector<2x4xf32>
      %358 = math.exp %357 : vector<2x4xf32>
      %cst_94 = arith.constant 1.000000e+00 : f32
      %359 = vector.broadcast %cst_94 : f32 to vector<2x4xf32>
      %360 = arith.addf %359, %358 : vector<2x4xf32>
      %361 = arith.divf %359, %360 : vector<2x4xf32>
      %cst_95 = arith.constant dense<0.000000e+00> : vector<2x128xf32>
      %362 = tpu.matmul %361, %3, %cst_95 {dimension_numbers = #tpu.dot_dimension_numbers<[1], [0], [0], [1], [0, 0, 1, 1], [], []>} : vector<2x4xf32>, vector<4x128xf32>, vector<2x128xf32> -> vector<2x128xf32>
      %363 = arith.subf %345, %355 : vector<2x16xf32>
      %364 = vector.extract_strided_slice %363 {offsets = [0, 0], sizes = [1, 16], strides = [1, 1]} : vector<2x16xf32> to vector<1x16xf32>
      %cst_96 = arith.constant dense<0.000000e+00> : vector<1x128xf32>
      %365 = tpu.matmul %364, %319, %cst_96 {dimension_numbers = #tpu.dot_dimension_numbers<[1], [0], [0], [1], [0, 0, 1, 1], [], []>} : vector<1x16xf32>, vector<16x128xf32>, vector<1x128xf32> -> vector<1x128xf32>
      %366 = vector.extract_strided_slice %362 {offsets = [0, 0], sizes = [1, 128], strides = [1, 1]} : vector<2x128xf32> to vector<1x128xf32>
      %367 = arith.mulf %366, %365 : vector<1x128xf32>
      %368 = vector.extract_strided_slice %355 {offsets = [0, 0], sizes = [1, 16], strides = [1, 1]} : vector<2x16xf32> to vector<1x16xf32>
      %cst_97 = arith.constant dense<0.000000e+00> : vector<16x128xf32>
      %369 = tpu.matmul %368, %367, %cst_97 {dimension_numbers = #tpu.dot_dimension_numbers<[0], [0], [1], [1], [0, 1, 1, 1], [], []>} : vector<1x16xf32>, vector<1x128xf32>, vector<16x128xf32> -> vector<16x128xf32>
      %370 = arith.addf %319, %369 : vector<16x128xf32>
      %371 = vector.extract_strided_slice %363 {offsets = [1, 0], sizes = [1, 16], strides = [1, 1]} : vector<2x16xf32> to vector<1x16xf32>
      %cst_98 = arith.constant dense<0.000000e+00> : vector<1x128xf32>
      %372 = tpu.matmul %371, %326, %cst_98 {dimension_numbers = #tpu.dot_dimension_numbers<[1], [0], [0], [1], [0, 0, 1, 1], [], []>} : vector<1x16xf32>, vector<16x128xf32>, vector<1x128xf32> -> vector<1x128xf32>
      %373 = vector.extract_strided_slice %362 {offsets = [1, 0], sizes = [1, 128], strides = [1, 1]} : vector<2x128xf32> to vector<1x128xf32>
      %374 = arith.mulf %373, %372 : vector<1x128xf32>
      %375 = vector.extract_strided_slice %355 {offsets = [1, 0], sizes = [1, 16], strides = [1, 1]} : vector<2x16xf32> to vector<1x16xf32>
      %cst_99 = arith.constant dense<0.000000e+00> : vector<16x128xf32>
      %376 = tpu.matmul %375, %374, %cst_99 {dimension_numbers = #tpu.dot_dimension_numbers<[0], [0], [1], [1], [0, 1, 1, 1], [], []>} : vector<1x16xf32>, vector<1x128xf32>, vector<16x128xf32> -> vector<16x128xf32>
      %377 = arith.addf %326, %376 : vector<16x128xf32>
      %378 = vector.extract_strided_slice %20 {offsets = [7, 0], sizes = [1, 32], strides = [1, 1]} : vector<8x32xf32> to vector<1x32xf32>
      %379 = vector.extract_strided_slice %378 {offsets = [0, 0], sizes = [1, 16], strides = [1, 1]} : vector<1x32xf32> to vector<1x16xf32>
      %cst_100 = arith.constant dense<0.000000e+00> : vector<1x128xf32>
      %380 = tpu.matmul %379, %370, %cst_100 {dimension_numbers = #tpu.dot_dimension_numbers<[1], [0], [0], [1], [0, 0, 1, 1], [], []>} : vector<1x16xf32>, vector<16x128xf32>, vector<1x128xf32> -> vector<1x128xf32>
      %381 = vector.extract_strided_slice %378 {offsets = [0, 16], sizes = [1, 16], strides = [1, 1]} : vector<1x32xf32> to vector<1x16xf32>
      %cst_101 = arith.constant dense<0.000000e+00> : vector<1x128xf32>
      %382 = tpu.matmul %381, %377, %cst_101 {dimension_numbers = #tpu.dot_dimension_numbers<[1], [0], [0], [1], [0, 0, 1, 1], [], []>} : vector<1x16xf32>, vector<16x128xf32>, vector<1x128xf32> -> vector<1x128xf32>
      %383 = vector.extract_strided_slice %380 {offsets = [0, 0], sizes = [1, 16], strides = [1, 1]} : vector<1x128xf32> to vector<1x16xf32>
      %384 = vector.extract_strided_slice %382 {offsets = [0, 0], sizes = [1, 16], strides = [1, 1]} : vector<1x128xf32> to vector<1x16xf32>
      %385 = tpu.concatenate %383, %384 in 1 : vector<1x16xf32>, vector<1x16xf32> -> vector<1x32xf32>
      %386 = tpu.concatenate %380, %382 in 0 : vector<1x128xf32>, vector<1x128xf32> -> vector<2x128xf32>
      %387 = vector.extract_strided_slice %386 {offsets = [0, 16], sizes = [2, 16], strides = [1, 1]} : vector<2x128xf32> to vector<2x16xf32>
      %cst_102 = arith.constant dense<0xFF800000> : vector<2xf32>
      %388 = vector.multi_reduction <maximumf>, %387, %cst_102 [1] : vector<2x16xf32> to vector<2xf32>
      %389 = vector.shape_cast %388 : vector<2xf32> to vector<2x1xf32>
      %390 = vector.broadcast %389 : vector<2x1xf32> to vector<2x16xf32>
      %391 = arith.subf %387, %390 : vector<2x16xf32>
      %392 = math.exp %391 : vector<2x16xf32>
      %cst_103 = arith.constant dense<0.000000e+00> : vector<2xf32>
      %393 = vector.multi_reduction <add>, %392, %cst_103 [1] : vector<2x16xf32> to vector<2xf32>
      %394 = vector.shape_cast %393 : vector<2xf32> to vector<2x1xf32>
      %395 = vector.broadcast %394 : vector<2x1xf32> to vector<2x16xf32>
      %396 = arith.divf %392, %395 : vector<2x16xf32>
      %397 = vector.extract_strided_slice %386 {offsets = [0, 32], sizes = [2, 16], strides = [1, 1]} : vector<2x128xf32> to vector<2x16xf32>
      %cst_104 = arith.constant dense<0xFF800000> : vector<2xf32>
      %398 = vector.multi_reduction <maximumf>, %397, %cst_104 [1] : vector<2x16xf32> to vector<2xf32>
      %399 = vector.shape_cast %398 : vector<2xf32> to vector<2x1xf32>
      %400 = vector.broadcast %399 : vector<2x1xf32> to vector<2x16xf32>
      %401 = arith.subf %397, %400 : vector<2x16xf32>
      %402 = math.exp %401 : vector<2x16xf32>
      %cst_105 = arith.constant dense<0.000000e+00> : vector<2xf32>
      %403 = vector.multi_reduction <add>, %402, %cst_105 [1] : vector<2x16xf32> to vector<2xf32>
      %404 = vector.shape_cast %403 : vector<2xf32> to vector<2x1xf32>
      %405 = vector.broadcast %404 : vector<2x1xf32> to vector<2x16xf32>
      %406 = arith.divf %402, %405 : vector<2x16xf32>
      %407 = vector.extract_strided_slice %386 {offsets = [0, 48], sizes = [2, 4], strides = [1, 1]} : vector<2x128xf32> to vector<2x4xf32>
      %408 = arith.negf %407 : vector<2x4xf32>
      %409 = math.exp %408 : vector<2x4xf32>
      %cst_106 = arith.constant 1.000000e+00 : f32
      %410 = vector.broadcast %cst_106 : f32 to vector<2x4xf32>
      %411 = arith.addf %410, %409 : vector<2x4xf32>
      %412 = arith.divf %410, %411 : vector<2x4xf32>
      %cst_107 = arith.constant dense<0.000000e+00> : vector<2x128xf32>
      %413 = tpu.matmul %412, %3, %cst_107 {dimension_numbers = #tpu.dot_dimension_numbers<[1], [0], [0], [1], [0, 0, 1, 1], [], []>} : vector<2x4xf32>, vector<4x128xf32>, vector<2x128xf32> -> vector<2x128xf32>
      %414 = arith.subf %396, %406 : vector<2x16xf32>
      %415 = vector.extract_strided_slice %414 {offsets = [0, 0], sizes = [1, 16], strides = [1, 1]} : vector<2x16xf32> to vector<1x16xf32>
      %cst_108 = arith.constant dense<0.000000e+00> : vector<1x128xf32>
      %416 = tpu.matmul %415, %370, %cst_108 {dimension_numbers = #tpu.dot_dimension_numbers<[1], [0], [0], [1], [0, 0, 1, 1], [], []>} : vector<1x16xf32>, vector<16x128xf32>, vector<1x128xf32> -> vector<1x128xf32>
      %417 = vector.extract_strided_slice %413 {offsets = [0, 0], sizes = [1, 128], strides = [1, 1]} : vector<2x128xf32> to vector<1x128xf32>
      %418 = arith.mulf %417, %416 : vector<1x128xf32>
      %419 = vector.extract_strided_slice %406 {offsets = [0, 0], sizes = [1, 16], strides = [1, 1]} : vector<2x16xf32> to vector<1x16xf32>
      %cst_109 = arith.constant dense<0.000000e+00> : vector<16x128xf32>
      %420 = tpu.matmul %419, %418, %cst_109 {dimension_numbers = #tpu.dot_dimension_numbers<[0], [0], [1], [1], [0, 1, 1, 1], [], []>} : vector<1x16xf32>, vector<1x128xf32>, vector<16x128xf32> -> vector<16x128xf32>
      %421 = arith.addf %370, %420 : vector<16x128xf32>
      %422 = vector.extract_strided_slice %414 {offsets = [1, 0], sizes = [1, 16], strides = [1, 1]} : vector<2x16xf32> to vector<1x16xf32>
      %cst_110 = arith.constant dense<0.000000e+00> : vector<1x128xf32>
      %423 = tpu.matmul %422, %377, %cst_110 {dimension_numbers = #tpu.dot_dimension_numbers<[1], [0], [0], [1], [0, 0, 1, 1], [], []>} : vector<1x16xf32>, vector<16x128xf32>, vector<1x128xf32> -> vector<1x128xf32>
      %424 = vector.extract_strided_slice %413 {offsets = [1, 0], sizes = [1, 128], strides = [1, 1]} : vector<2x128xf32> to vector<1x128xf32>
      %425 = arith.mulf %424, %423 : vector<1x128xf32>
      %426 = vector.extract_strided_slice %406 {offsets = [1, 0], sizes = [1, 16], strides = [1, 1]} : vector<2x16xf32> to vector<1x16xf32>
      %cst_111 = arith.constant dense<0.000000e+00> : vector<16x128xf32>
      %427 = tpu.matmul %426, %425, %cst_111 {dimension_numbers = #tpu.dot_dimension_numbers<[0], [0], [1], [1], [0, 1, 1, 1], [], []>} : vector<1x16xf32>, vector<1x128xf32>, vector<16x128xf32> -> vector<16x128xf32>
      %428 = arith.addf %377, %427 : vector<16x128xf32>
      %429 = tpu.concatenate %28, %79, %130, %181, %232, %283, %334, %385 in 0 : vector<1x32xf32>, vector<1x32xf32>, vector<1x32xf32>, vector<1x32xf32>, vector<1x32xf32>, vector<1x32xf32>, vector<1x32xf32>, vector<1x32xf32> -> vector<8x32xf32>
      %c0_112 = arith.constant 0 : index
      %430 = arith.index_cast %17 : i32 to index
      %c0_113 = arith.constant 0 : index
      %431 = vector.load %arg5[%c0_112, %430, %c0_113] : memref<1x16x32xf32, #tpu.memory_space<vmem>>, vector<1x8x32xf32>
      %432 = vector.shape_cast %431 : vector<1x8x32xf32> to vector<8x32xf32>
      %433 = vector.shape_cast %429 : vector<8x32xf32> to vector<1x8x32xf32>
      tpu.vector_store %arg5[%c0_112, %430, %c0_113], %433 {strides = array<i32>} : memref<1x16x32xf32, #tpu.memory_space<vmem>>, vector<1x8x32xf32>,
      scf.yield %421, %428 : vector<16x128xf32>, vector<16x128xf32>
    }
    %c2_i32_8 = arith.constant 2 : i32
    %c0_9 = arith.constant 0 : index
    %c0_10 = arith.constant 0 : index
    %c0_11 = arith.constant 0 : index
    %10 = vector.load %arg6[%c0_9, %c0_10, %c0_11] : memref<2x16x128xf32, #tpu.memory_space<vmem>>, vector<1x16x128xf32>
    %11 = vector.shape_cast %10 : vector<1x16x128xf32> to vector<16x128xf32>
    %12 = vector.shape_cast %9#0 : vector<16x128xf32> to vector<1x16x128xf32>
    tpu.vector_store %arg6[%c0_9, %c0_10, %c0_11], %12 {strides = array<i32>} : memref<2x16x128xf32, #tpu.memory_space<vmem>>, vector<1x16x128xf32>,
    %c1_12 = arith.constant 1 : index
    %c0_13 = arith.constant 0 : index
    %c0_14 = arith.constant 0 : index
    %13 = vector.load %arg6[%c1_12, %c0_13, %c0_14] : memref<2x16x128xf32, #tpu.memory_space<vmem>>, vector<1x16x128xf32>
    %14 = vector.shape_cast %13 : vector<1x16x128xf32> to vector<16x128xf32>
    %15 = vector.shape_cast %9#1 : vector<16x128xf32> to vector<1x16x128xf32>
    tpu.vector_store %arg6[%c1_12, %c0_13, %c0_14], %15 {strides = array<i32>} : memref<2x16x128xf32, #tpu.memory_space<vmem>>, vector<1x16x128xf32>,
    return
  }
  func.func @transform_0(%arg0: i32, %arg1: i32) -> (i32, i32, i32) {
    %c0_i32 = arith.constant 0 : i32
    %c0_i32_0 = arith.constant 0 : i32
    return %arg0, %arg1, %c0_i32 : i32, i32, i32
  }
  func.func @transform_1(%arg0: i32, %arg1: i32) -> (i32, i32, i32) {
    %c0_i32 = arith.constant 0 : i32
    %c0_i32_0 = arith.constant 0 : i32
    %c0_i32_1 = arith.constant 0 : i32
    %c0_i32_2 = arith.constant 0 : i32
    return %c0_i32, %c0_i32_0, %c0_i32_1 : i32, i32, i32
  }
  func.func @transform_2(%arg0: i32, %arg1: i32) -> (i32, i32) {
    %c0_i32 = arith.constant 0 : i32
    %c0_i32_0 = arith.constant 0 : i32
    %c0_i32_1 = arith.constant 0 : i32
    return %c0_i32, %c0_i32_0 : i32, i32
  }
  func.func @transform_3(%arg0: i32, %arg1: i32) -> (i32, i32, i32) {
    %c0_i32 = arith.constant 0 : i32
    %c0_i32_0 = arith.constant 0 : i32
    return %arg0, %arg1, %c0_i32 : i32, i32, i32
  }
}

</mosaic_0001>

<bundles_post_ra>
// kernel: tpu_custom_call.1
= control target key start
LH: loop header
LB: loop body
LE: loop exit
PB: predicated region body
PF: predicated region fallthrough
CT: control target
= control target key end

     0   :  { %8 = vsyncpa [#allocation4], 0  ;;  %s7834_s0 = inlined_call_operand.hbm [shape: f32[2,16,32], index: 0, kind: input, shape index: {}]   ;;  %s7835_s1 = inlined_call_operand.hbm [shape: f32[2,16,128], index: 1, kind: input, shape index: {}]   ;;  %s7836_s2 = inlined_call_operand.vmem [shape: f32[4,128], index: 2, kind: input, shape index: {}]   ;;  %s7837_s3 = inlined_call_operand.hbm [shape: f32[2,16,32], index: 3, kind: output, shape index: {}]  }
   0x1   :  { %10 = vsyncpa [#allocation4 + $0x1], 0 }
   0x2   :  { %11 = vsyncpa [#allocation7], 0 }
   0x3   :  { %12 = vsyncpa [#allocation5], 0 }
   0x4   :  { %14 = vsyncpa [#allocation5 + $0x1], 0  ;;  %s6965_s12 = smov 0   ;;  %s6967_s13 = smov 0  }
   0x5   :  { %s6969_s14 = smov 0   ;;  %s6971_s15 = smov 0  }
   0x6   :  { %s6973_s16 = smov 0   ;;  %s6975_s17 = smov 0  }
   0x7 LB: > { %s5800_s18 = sadd.s32 4294967295, %s6909_s17   ;;  %s5801_s19 = sadd.s32 4294967294, %s6909_s17   ;;  %s6909_s17 = sphi %s6975_s17, %s20_s17   ;;  %s6905_s16 = sphi %s6973_s16, %s7861_s16   ;;  %s6901_s15 = sphi %s6971_s15, %s7860_s15   ;;  %s6897_s14 = sphi %s6969_s14, %s7859_s14   ;;  %s6893_s13 = sphi %s6967_s13, %s7858_s13   ;;  %s6889_s12 = sphi %s6965_s12, %s7857_s12  }
   0x8   : > { %p54_p0 = scmp.ne.s32.totalorder %s6893_s13, %s6889_s12  ;;  %p6999_p1 = scmp.eq.s32.totalorder %s5800_s18, 0 }
   0x9   : > { %p7003_p2 = scmp.eq.s32.totalorder %s5800_s18, 1  ;;  %p128_p3 = scmp.eq.s32.totalorder %s5801_s19, 1 }
   0xa   : > { %s7842_s20 = scalar_select %p6999_p1, 1, 0 }
   0xb   : > { %s7843_s21 = scalar_select %p7003_p2, 1, 0 }
   0xc   : > { %p7009_p4 = por %p6999_p1, %p54_p0  ;;  %p5802_p5 = scmp.ge.s32.totalorder %s6909_s17, 1 }
   0xd   : > { %p7014_p6 = por %p128_p3, %p54_p0  ;;  %p135_p7 = scmp.lt.s32.totalorder %s6909_s17, 3 }
   0xe   : > { %s7844_s22 = scalar_select %p7009_p4, 1, 0 }
   0xf   : > { %s7845_s23 = scalar_select %p7014_p6, 1, 0 }
  0x10   : > { %p7019_p8 = pnand %p5802_p5, %p135_p7  ;;  %s6931_s25 = smov [#allocation6]  }
  0x11   : > { %s147_s26 = sshll.u32 %s6931_s25, 4  ;;  %s32_s28 = sadd.s32 1, %s6905_s16  ;;  %s148_s26 = int_to_ptr.vmem [resolvable:$true] %s147_s26 }
  0x12   : > { %s7846_s24 = scalar_select %p7019_p8, 1, 0 }
  0x13   : > { %p6532_p9 = pneg %p7019_p8  ;;  %s6745_s4 = scalar_lea.hbm %s7835_s1, 512 }
  0x14   : > { %p6746_p12 = scmp.ne.s32.totalorder %s7835_s1, %s6745_s4  ;;  %p6752_p5 = scmp.lt.u32.totalorder %s6745_s4, %s7835_s1 }
  0x15   : > { %p7028_p11 = pnand %p6532_p9, %p6999_p1 }
  0x17   : > { %p6747_p13 = pneg %p7028_p11 }
  0x19   : > { %p6748_p0 = pnand %p6747_p13, %p6746_p12 }
  0x1b   : > { %p6749_p3 = pneg %p6748_p0 }
  0x1d   : > { %p6754_p7 = pnand %p6752_p5, %p6749_p3 }
  0x1f   : > { %6757 = shalt.err (!%p6754_p7)
}
  0x20   : > { %s6758_s9 = scalar_lea.vmem %s148_s26, 512  ;;  %p6766_p1 = scmp.lt.s32.totalorder %s148_s26, %s148_s26 }
  0x21   : > { %p6759_p9 = scmp.ne.s32.totalorder %s148_s26, %s6758_s9  ;;  %p6767_p4 = scmp.lt.s32.totalorder %s6758_s9, %s6758_s9 }
  0x23   : > { %p6761_p10 = pnand %p6759_p9, %p6747_p13  ;;  %p6768_p8 = por %p6767_p4, %p6766_p1 }
  0x25   : > { %p6762_p6 = pneg %p6761_p10 }
  0x27   : > { %p6769_p2 = pnand %p6768_p8, %p6762_p6 }
  0x29   : > { %6772 = shalt.err (!%p6769_p2)
}
  0x2a   : > { %s6932_s10 = smov 128   ;;  %s6933_s11 = smov 8  }
  0x2b   : > { %6535 = dma.hbm_to_vmem [thread:$0]  (!%p7028_p11), %s7835_s1, 512, %s148_s26, [#allocation7], %s6932_s10, %s6932_s10, %s6933_s11  }
  0x2c   : > { %p34_p1 = scmp.ge.s32.totalorder %s32_s28, 2  ;;  %s41_s25 = sadd.s32 1, %s6897_s14 }
  0x2d   : > { %p48_p2 = scmp.ne.s32.totalorder %s6897_s14, %s6893_s13  ;;  %p49_p4 = scmp.eq.s32.totalorder %s6909_s17, 0 }
  0x2e   : > { %s7863_s28 = smov (%p34_p1, %s32_s28), 0  ;;  %p7849_p8 = scmp.ne.s32.totalorder %s7843_s21, 0 }
  0x2f   : > { %p7058_p6 = por %p49_p4, %p48_p2  ;;  %s36_s30 = ssub.s32 %s6905_s16, %s7863_s28 }
  0x30   : > { %p7064_p10 = por %p7849_p8, %p48_p2  ;;  %p6545_p12 = scmp.lt.s32.totalorder %s6909_s17, 2 }
  0x31   : > { %p39_p11 = scmp.eq.s32.totalorder %s36_s30, 0  ;;  %s164_s26 = sand.u32 1, %s6897_s14  }
  0x32   : > { %s5805_s4 = sshll.u32 %s164_s26, 4  ;;  %s5922_s6 = sshll.u32 %s6905_s16, 8 }
  0x33   : > { %s7073_s5 = scalar_select %p39_p11, %s6897_s14, %s41_s25  }
  0x34   : > { %s7079_s9 = scalar_lea.hbm %s7834_s0, %s5922_s6  ;;  %s168_s21 = scalar_lea.vmem [#allocation3], %s5805_s4 }
  0x35   : > { %s177_s18 = sshll.u32 %s168_s21, 4  ;;  %p7085_p13 = pnand %p6545_p12, %p7058_p6  ;;  %s7081_s18 = int_to_ptr.vmem [resolvable:$true] %s177_s18 }
  0x36   : > { %s7089_s25 = scalar_lea.sflag [#allocation4], %s164_s26  ;;  %s6773_s30 = scalar_lea.hbm %s7079_s9, 256 }
  0x37   : > { %p6774_p0 = scmp.ne.s32.totalorder %s7079_s9, %s6773_s30  ;;  %p6775_p3 = pneg %p7085_p13 }
  0x38   : > { %s6778_s29 = scalar_lea.hbm %s7834_s0, 512  ;;  %p6779_p9 = scmp.lt.u32.totalorder %s7079_s9, %s7834_s0 }
  0x39   : > { %p6776_p5 = pnand %p6775_p3, %p6774_p0  ;;  %p6780_p1 = scmp.lt.u32.totalorder %s6778_s29, %s6773_s30 }
  0x3a   : > { %p6782_p4 = scmp.lt.u32.totalorder %s6773_s30, %s7079_s9 }
  0x3b   : > { %p6777_p7 = pneg %p6776_p5  ;;  %p6781_p2 = por %p6780_p1, %p6779_p9 }
  0x3d   : > { %p6783_p6 = por %p6782_p4, %p6781_p2 }
  0x3f   : > { %p6784_p8 = pnand %p6783_p6, %p6777_p7 }
  0x41   : > { %6787 = shalt.err (!%p6784_p8)
}
  0x42   : > { %s6788_s26 = scalar_lea.vmem %s7081_s18, 256  ;;  %s6934_s21 = smov [#allocation3]  }
  0x43   : > { %p6789_p12 = scmp.ne.s32.totalorder %s7081_s18, %s6788_s26  ;;  %s6793_s4 = sshll.u32 %s6934_s21, 4  ;;  %s6794_s4 = int_to_ptr.vmem [resolvable:$false] %s6793_s4 }
  0x44   : > { %s6795_s6 = scalar_lea.vmem %s6794_s4, 512  ;;  %p6796_p5 = scmp.lt.s32.totalorder %s7081_s18, %s6794_s4 }
  0x45   : > { %p6791_p11 = pnand %p6789_p12, %p6775_p3  ;;  %p6797_p9 = scmp.lt.s32.totalorder %s6795_s6, %s6788_s26 }
  0x47   : > { %p6792_p0 = pneg %p6791_p11  ;;  %p6798_p1 = por %p6797_p9, %p6796_p5 }
  0x49   : > { %p6799_p2 = pnand %p6798_p1, %p6792_p0 }
  0x4b   : > { %6802 = shalt.err (!%p6799_p2)
}
  0x4c   : > { %6539 = dma.hbm_to_vmem [thread:$0]  (!%p7085_p13), %s7079_s9, 256, %s7081_s18, %s7089_s25, %s6932_s10, %s6932_s10, %s6933_s11  }
  0x4d   : > { %p7852_p3 = scmp.ne.s32.totalorder %s7846_s24, 0 }
  0x4e   : > { %s7123_s30 = sand.u32 (!%p7852_p3), 1, %s6893_s13   ;;  %p7853_p7 = scmp.ne.s32.totalorder (!%p7852_p3), %s7844_s22, 0 }
  0x4f   : > { %189 = sbr.rel (%p7852_p3) target bundleno = 10778 (0x2a1a), region = 32  ;;  %s5809_s29 = sshll.u32 (!%p7852_p3), %s7123_s30, 4 }
  0x50   : > { %s192_s7 = scalar_lea.sflag (!%p7852_p3), [#allocation4], %s7123_s30  ;;  %s7127_s8 = scalar_lea.vmem (!%p7852_p3), [#allocation3], %s5809_s29 }
  0x56   : > { %6876 = dma.done.wait (%p7853_p7), %s192_s7, 256  }
  0x57   : > { %6878 = vsyncadd (%p7853_p7), %s192_s7, 4294967040  ;;  %p7854_p13 = scmp.ne.s32.totalorder %s7842_s20, 0 }
  0x59   : > { %6880 = dma.done.wait (%p7854_p13), [#allocation7], 512  }
  0x5a   : > { %6882 = vsyncadd (%p7854_p13), [#allocation7], 4294966784  ;;  %v7140_v0 = vld [vmem:[%s7836_s2] sm:$0xf]  ;;  %v229_v2 = vld [vmem:[#allocation6 + $0x8] sm:$0xff]   ;;  %s7142_s11 = scalar_lea.vmem [#allocation8], %s5809_s29 }
  0x5b   : > { %v228_v1 = vld [vmem:[#allocation6] sm:$0xff]   ;;  %v230_v3 = vld [vmem:[#allocation6 + $0x10] sm:$0xff]   ;;  %v231_v4 = vld [vmem:[#allocation6 + $0x18] sm:$0xff]   ;;  %s7152_s20 = smov 0  }
  0x5c LB: >> { %v6935_v5 = vmov 0.0|0.0   ;;  %s5812_s22 = sshll.u32 %s6929_s20, 3  ;;  %v7174_v6 = vpack.c.bf16 %v6913_v4, %v6917_v3  ;;  %v6429_v7 = vpack.c.bf16 %v6921_v2, %v6925_v1  ;;  %vm6936_vm0 = vmmov 0   ;;  %s6938_s18 = smov 112   ;;  %s6929_s20 = sphi %s7152_s20, %s247_s20   ;;  %v6925_v1 = vphi %v228_v1, %v5422_v1   ;;  %v6921_v2 = vphi %v229_v2, %v5423_v2   ;;  %v6917_v3 = vphi %v230_v3, %v5624_v3   ;;  %v6913_v4 = vphi %v231_v4, %v5625_v4  }
  0x5d   : >> { %6431 = vmatprep.subr.bf16.mxu1 %v6935_v5  ;;  %6428 = vmatprep.subr.bf16.mxu0 %v6935_v5  ;;  %s7179_s9 = scalar_lea.vmem %s7127_s8, %s5812_s22 [#allocation3]  ;;  %v6937_v8 = vmov 0.0   ;;  %vm255_vm1 = vcmask 130048   ;;  %vm410_vm2 = vcmask 1040384   ;;  %vm429_vm3 = vcmask 386304   ;;  %s6939_s19 = smov 96  }
  0x5e   : >> { %6095 = vmatprep.mubr.msk.f32.mxu1 %vm6936_vm0, %v6937_v8  ;;  %6088 = vmatprep.mubr.msk.f32.mxu0 %vm6936_vm0, %v6937_v8  ;;  %v7188_v9 = vld [vmem:[%s7179_s9] sm:$0xff]  ;;  %vm412_vm4 = vcmask 255104   ;;  %vm423_vm5 = vcmask 123904   ;;  %vm457_vm6 = vcmask 1043456   ;;  %s6940_s25 = smov 80   ;;  %vm454_vm7 = vcmask 31744   ;;  %s5659_s21 = scalar_lea.vmem %s7142_s11, %s5812_s22 [#allocation8] }
  0x5f   : >> { %6433 = vmatpush3.bf16.msra.mxu1 %v7174_v6  ;;  %329 = vrot.lane.b32.xlu0 %v7188_v9, %s6938_s18  ;;  %v936_v52 = vrot.slane %v7188_v9, 1  ;;  %vm647_vm8 = vcmask 7168   ;;  %s6941_s26 = smov 16   ;;  %vm5648_vm9 = vcmask 1041408   ;;  %vm5650_vm10 = vcmask 1042432   ;;  %s247_s20 = sadd.s32 1, %s6929_s20  }
  0x60   : >> { %6430 = vmatpush3.bf16.msra.mxu0 %v6429_v7  ;;  %6434 = vmatprep.subr.bf16.mxu1 %v6935_v5  ;;  %vm5653_vm11 = vcmask 1044480   ;;  %vm5655_vm12 = vcmask 1045504   ;;  %vm5657_vm13 = vcmask 1046528   ;;  %vm5660_vm14 = vcmask 261120   ;;  %p244_p4 = scmp.ge.s32.totalorder %s247_s20, 2  }
  0x61   : >> { %6098 = vmatprep.subr.mxu0 %v6937_v8  ;;  %s5923_s4 = sshll.u32 (%p244_p4), %s6901_s15, 8  ;;  %s5682_s24 = sshll.u32 (%p244_p4), %s7142_s11, 4  ;;  %s7785_s24 = int_to_ptr.vmem [resolvable:$true] %s5682_s24 }
  0x62   : > { %s7782_s7 = scalar_lea.hbm (%p244_p4), %s7837_s3, %s5923_s4  ;;  %s5667_s10 = scalar_lea.sflag (%p244_p4), [#allocation5], %s7123_s30 }
  0x63   : >> { %6089 = vmatmul.mubr.msk.f32.vlgmr.msra.gmra.mrb[0].mxu0 %vm255_vm1, %v7188_v9  ;;  %s6803_s22 = scalar_lea.vmem (%p244_p4), %s7785_s24, 256  ;;  %s6942_s8 = smov (%p244_p4), [#allocation8]  }
  0x64   : >> { %6100 = vmatprep.mubr.msk.f32.mxu0 %vm6936_vm0, %v6937_v8  ;;  %6099 = vmatpush3.msk.msra.mxu0 %vm457_vm6, %v7140_v0  ;;  %p6804_p6 = scmp.ne.s32.totalorder (%p244_p4), %s7785_s24, %s6803_s22  ;;  %s6807_s20 = sshll.u32 (%p244_p4), %s6942_s8, 4  ;;  %s6808_s20 = int_to_ptr.vmem [resolvable:$false] %s6807_s20 }
  0x65   : > { %s6809_s15 = scalar_lea.vmem (%p244_p4), %s6808_s20, 512  ;;  %p6810_p11 = scmp.lt.s32.totalorder (%p244_p4), %s7785_s24, %s6808_s20 }
  0x66   : > { %p6805_p8 = pnand (%p244_p4), %p6804_p6, %p7064_p10  ;;  %p6811_p0 = scmp.lt.s32.totalorder (%p244_p4), %s6809_s15, %s6803_s22 }
  0x68   : > { %p6806_p12 = pneg (%p244_p4), %p6805_p8  ;;  %p6812_p5 = por (%p244_p4), %p6811_p0, %p6810_p11 }
  0x6a   : > { %p6813_p9 = pnand (%p244_p4), %p6812_p5, %p6806_p12 }
  0xd1   : >> { %v330_v10 = vpop.permute.xlu0 %329 }
  0xd2   : >> { %6096 = vmatmul.mubr.msk.f32.vlgmr.msra.gmra.mrb[0].mxu1 %vm255_vm1, %v330_v10 }
  0xd3   : >> { %6436 = vmatpush3.bf16.msra.mxu1 %v6429_v7  ;;  %6107 = vmatprep.mubr.msk.f32.mxu1 %vm6936_vm0, %v6937_v8 }
  0xd4   : >> { %6437 = vmatprep.subr.bf16.mxu1 %v6935_v5 }
 0x136   : >> { %v7203_v11 = vpop.f32.mrb[0].mxu0 }
 0x137   : >> { %v6090_v12 = vpop.f32.mrb[1].mxu0 }
 0x1a5   : >> { %v7205_v13 = vpop.f32.mrb[0].mxu1 }
 0x1a6   : >> { %v408_v14 = vrot.slane %v7205_v13, 7  ;;  %v6097_v15 = vpop.f32.mrb[1].mxu1 }
 0x1a8   : >> { %v411_v16 = vsel %vm410_vm2, %v7203_v11, %v408_v14 }
 0x1a9   : >> { %v430_v17 = vsel %vm429_vm3, %v411_v16, -inf  ;;  %v413_v18 = vsel %vm412_vm4, %v411_v16, -inf  ;;  %v5815_v27 = vmul.f32 -1.442695, %v411_v16 }
 0x1aa   : >> { %431 = vmax.xlane.f32.xlu0 %v430_v17  ;;  %414 = vmax.xlane.f32.xlu1 %v413_v18 }
 0x237   : >> { %v432_v19 = vpop.xlane.xlu0 %431  ;;  %v415_v20 = vpop.xlane.xlu1 %414 }
 0x238   : >> { %v433_v21 = vsub.f32 %v411_v16, %v432_v19  ;;  %v416_v22 = vsub.f32 %v411_v16, %v415_v20 }
 0x23a   : >> { %v434_v23 = vmul.f32 1.442695, %v433_v21  ;;  %v417_v24 = vmul.f32 1.442695, %v416_v22 }
 0x23c   : >> { %6648 = vpow2.f32 %v434_v23 }
 0x23d   : >> { %6650 = vpow2.f32 %v417_v24 }
 0x23e   : >> { %6652 = vpow2.f32 %v5815_v27 }
 0x246   : >> { %v6649_v25 = vpop.eup %6648 }
 0x247   : >> { %437 = vrot.lane.b32.xlu1 %v6649_v25, %s6939_s19  ;;  %v6651_v26 = vpop.eup %6650 }
 0x248   : >> { %v6653_v29 = vpop.eup %6652 }
 0x249   : >> { %v448_v31 = vadd.f32 1.0, %v6653_v29 }
 0x24b   : >> { %420 = vrot.lane.b32.xlu1 %v6651_v26, %s6938_s18  ;;  %6654 = vrcp.f32 %v448_v31 }
 0x255   : >> { %v6655_v34 = vpop.eup %6654 }
 0x2b9   : >> { %v438_v28 = vpop.permute.xlu1 %437 }
 0x2ba   : >> { %v440_v30 = vsel %vm423_vm5, %v438_v28, 0.0 }
 0x2bb   : >> { %441 = vadd.xlane.f32.xlu1 %v440_v30 }
 0x2bd   : >> { %v421_v32 = vpop.permute.xlu1 %420 }
 0x2be   : >> { %v424_v33 = vsel %vm423_vm5, %v421_v32, 0.0 }
 0x2bf   : >> { %425 = vadd.xlane.f32.xlu0 %v424_v33 }
 0x2cc   : >> { %452 = vrot.lane.b32.xlu1 %v6655_v34, %s6940_s25 }
 0x348   : >> { %v442_v35 = vpop.xlane.xlu1 %441 }
 0x349   : >> { %6656 = vrcp.f32 %v442_v35 }
 0x34c   : >> { %v453_v36 = vpop.permute.xlu1 %452  ;;  %v426_v39 = vpop.xlane.xlu0 %425 }
 0x34d   : >> { %6101 = vmatmul.mubr.msk.f32.vlgmr.msra.gmra.mrb[2].mxu0 %vm454_vm7, %v453_v36  ;;  %6658 = vrcp.f32 %v426_v39 }
 0x353   : >> { %v6657_v37 = vpop.eup %6656 }
 0x354   : >> { %v444_v38 = vmul.f32 %v6657_v37, %v6649_v25 }
 0x356   : >> { %532 = vrot.lane.b32.xlu0 %v444_v38, %s6938_s18  ;;  %v813_v45 = vrot.slane %v444_v38, 1 }
 0x357   : >> { %v6659_v40 = vpop.eup %6658 }
 0x358   : >> { %v428_v41 = vmul.f32 %v6659_v40, %v6651_v26 }
 0x3c8   : >> { %v533_v42 = vpop.permute.xlu0 %532 }
 0x3c9   : >> { %v535_v43 = vsub.f32 %v428_v41, %v533_v42 }
 0x3cb   : >> { %537 = vrot.lane.b32.xlu0 %v535_v43, %s6938_s18  ;;  %v734_v44 = vrot.slane %v535_v43, 1 }
 0x3cf   : >> { %735 = vrot.lane.b32.xlu0 %v734_v44, %s6938_s18 }
 0x3d3   : >> { %612 = vrot.lane.b32.xlu0 %v444_v38, %s6939_s19 }
 0x3d7   : >> { %814 = vrot.lane.b32.xlu0 %v813_v45, %s6939_s19 }
 0x420   : >> { %v527_v46 = vpop.f32.mrb[2].mxu0 }
 0x421   : >> { %v6102_v47 = vpop.f32.mrb[3].mxu0 }
 0x43d   : >> { %v538_v48 = vpop.permute.xlu0 %537 }
 0x43e   : >> { %6108 = vmatmul.mubr.msk.f32.vlgmr.msra.gmra.mrb[2].mxu1 %vm255_vm1, %v538_v48 }
 0x43f   : >> { %6439 = vmatpush3.bf16.msra.mxu1 %v7174_v6  ;;  %6119 = vmatprep.mubr.msk.f32.mxu1 %vm6936_vm0, %v6937_v8 }
 0x440   : >> { %6440 = vmatprep.subr.bf16.mxu1 %v6935_v5 }
 0x441   : >> { %v736_v49 = vpop.permute.xlu0 %735 }
 0x442   : >> { %6120 = vmatmul.mubr.msk.f32.vlgmr.msra.gmra.mrb[4].mxu1 %vm255_vm1, %v736_v49 }
 0x443   : >> { %6131 = vmatprep.mubr.msk.f32.mxu1 %vm6936_vm0, %v6937_v8 }
 0x445   : >> { %v613_v50 = vpop.permute.xlu0 %612 }
 0x446   : >> { %615 = vxpose.xlu0.b32.start.end [1/1] (short) (narrow) %v613_v50, 16 }
 0x449   : >> { %v815_v51 = vpop.permute.xlu0 %814 }
 0x44a   : >> { %817 = vxpose.xlu1.b32.start.end [1/1] (short) (narrow) %v815_v51, 16 }
 0x473   : >> { %1009 = vrot.lane.b32.xlu0 %v936_v52, %s6938_s18 }
 0x4c6   : >> { %v631_v53 = vpop.trf.xlu0 }
 0x4c7   : >> { %6112 = vmatprep.mubr.msk.f32.mxu0 %vm647_vm8, %v631_v53 }
 0x4ca   : >> { %v632_v57 = vpop.trf.xlu0  ;;  %v833_v58 = vpop.trf.xlu1 }
 0x4ce   : >> { %v834_v6 = vpop.trf.xlu1 }
 0x511   : >> { %v607_v54 = vpop.f32.mrb[2].mxu1 }
 0x512   : >> { %v611_v55 = vmul.f32 %v607_v54, %v527_v46  ;;  %v6109_v56 = vpop.f32.mrb[3].mxu1 }
 0x514   : >> { %6110 = vmatprep.subr.msk.mxu0 %vm410_vm2, %v611_v55 }
 0x515   : >> { %6111 = vmatpush3.msk.msra.mxu0 %vm410_vm2, %v611_v55  ;;  %v805_v59 = vpop.f32.mrb[4].mxu1 }
 0x516   : >> { %v810_v60 = vrot.slane %v805_v59, 7  ;;  %v6121_v61 = vpop.f32.mrb[5].mxu1  ;;  %6113 = vmatmul.mubr.msk.f32.vlgmr.msra.gmra.mrb[4].mxu0 %vm647_vm8, %v632_v57 }
 0x517   : >> { %6124 = vmatprep.mubr.msk.f32.mxu0 %vm647_vm8, %v833_v58  ;;  %v1606_v58 = vrot.slane %v7188_v9, 2 }
 0x518   : >> { %v812_v62 = vmul.f32 %v810_v60, %v527_v46 }
 0x51a   : >> { %v850_v63 = vrot.slane %v812_v62, 1 }
 0x51c   : >> { %6122 = vmatprep.subr.msk.mxu0 %vm410_vm2, %v850_v63 }
 0x51d   : >> { %6123 = vmatpush3.msk.msra.mxu0 %vm410_vm2, %v850_v63 }
 0x51e   : >> { %6125 = vmatmul.mubr.msk.f32.vlgmr.msra.gmra.mrb[6].mxu0 %vm647_vm8, %v834_v6  ;;  %6443 = vmatprep.subr.bf16.mxu0 %v6935_v5 }
 0x51f   : >> { %6138 = vmatprep.mubr.msk.f32.mxu0 %vm6936_vm0, %v6937_v8 }
 0x5e9   : >> { %v6114_v7 = vpop.f32.mrb[4].mxu0 }
 0x5ea   : >> { %v7247_v10 = vadd.f32 %v6921_v2, %v6114_v7  ;;  %v723_v12 = vpop.f32.mrb[5].mxu0 }
 0x5eb   : >> { %v7250_v14 = vadd.f32 %v6925_v1, %v723_v12 }
 0x5ed   : >> { %v6441_v15 = vpack.c.bf16 %v7247_v10, %v7250_v14 }
 0x5ef   : >> { %6442 = vmatpush3.bf16.msra.mxu1 %v6441_v15 }
 0x5f0   : >> { %6141 = vmatprep.subr.mxu1 %v6937_v8 }
 0x5f1   : >> { %v6126_v16 = vpop.f32.mrb[6].mxu0 }
 0x5f2   : >> { %v7256_v17 = vadd.f32 %v6913_v4, %v6126_v16  ;;  %v925_v18 = vpop.f32.mrb[7].mxu0  ;;  %6132 = vmatmul.mubr.msk.f32.vlgmr.msra.gmra.mrb[6].mxu1 %vm255_vm1, %v936_v52  ;;  %v1010_v4 = vpop.permute.xlu0 %1009 }
 0x5f3   : >> { %v7260_v2 = vadd.f32 %v6917_v3, %v925_v18  ;;  %6142 = vmatpush3.msk.msra.mxu1 %vm457_vm6, %v7140_v0  ;;  %6143 = vmatprep.mubr.msk.f32.mxu1 %vm6936_vm0, %v6937_v8 }
 0x5f5   : >> { %v7268_v1 = vpack.c.bf16 %v7256_v17, %v7260_v2 }
 0x5f7   : >> { %6445 = vmatpush3.bf16.msra.mxu0 %v7268_v1 }
 0x5f8   : >> { %6446 = vmatprep.subr.bf16.mxu0 %v6935_v5 }
 0x5fa   : >> { %6139 = vmatmul.mubr.msk.f32.vlgmr.msra.gmra.mrb[8].mxu0 %vm255_vm1, %v1010_v4 }
 0x5fb   : >> { %6448 = vmatpush3.bf16.msra.mxu0 %v6441_v15  ;;  %6150 = vmatprep.mubr.msk.f32.mxu0 %vm6936_vm0, %v6937_v8 }
 0x5fc   : >> { %6449 = vmatprep.subr.bf16.mxu0 %v6935_v5 }
 0x6c5   : >> { %v7276_v3 = vpop.f32.mrb[6].mxu1 }
 0x6c6   : >> { %v6133_v19 = vpop.f32.mrb[7].mxu1 }
 0x6cd   : >> { %v7278_v20 = vpop.f32.mrb[8].mxu0 }
 0x6ce   : >> { %v1088_v21 = vrot.slane %v7278_v20, 7  ;;  %v6140_v22 = vpop.f32.mrb[9].mxu0 }
 0x6d0   : >> { %v1090_v23 = vsel %vm410_vm2, %v7276_v3, %v1088_v21 }
 0x6d1   : >> { %v1106_v24 = vsel %vm429_vm3, %v1090_v23, -inf  ;;  %v1091_v25 = vsel %vm412_vm4, %v1090_v23, -inf  ;;  %v5828_v38 = vmul.f32 -1.442695, %v1090_v23 }
 0x6d2   : >> { %1107 = vmax.xlane.f32.xlu1 %v1106_v24  ;;  %1092 = vmax.xlane.f32.xlu0 %v1091_v25 }
 0x75f   : >> { %v1108_v26 = vpop.xlane.xlu1 %1107  ;;  %v1093_v27 = vpop.xlane.xlu0 %1092 }
 0x760   : >> { %v1109_v28 = vsub.f32 %v1090_v23, %v1108_v26  ;;  %v1094_v29 = vsub.f32 %v1090_v23, %v1093_v27 }
 0x762   : >> { %v1110_v30 = vmul.f32 1.442695, %v1109_v28  ;;  %v1095_v31 = vmul.f32 1.442695, %v1094_v29 }
 0x764   : >> { %6660 = vpow2.f32 %v1110_v30 }
 0x765   : >> { %6662 = vpow2.f32 %v1095_v31 }
 0x766   : >> { %6664 = vpow2.f32 %v5828_v38 }
 0x76e   : >> { %v6661_v32 = vpop.eup %6660 }
 0x76f   : >> { %1113 = vrot.lane.b32.xlu1 %v6661_v32, %s6939_s19  ;;  %v6663_v33 = vpop.eup %6662 }
 0x770   : >> { %v6665_v39 = vpop.eup %6664 }
 0x771   : >> { %v1124_v41 = vadd.f32 1.0, %v6665_v39 }
 0x773   : >> { %1098 = vrot.lane.b32.xlu1 %v6663_v33, %s6938_s18 }
 0x7e1   : >> { %v1114_v34 = vpop.permute.xlu1 %1113 }
 0x7e2   : >> { %v1116_v35 = vsel %vm423_vm5, %v1114_v34, 0.0 }
 0x7e3   : >> { %1117 = vadd.xlane.f32.xlu0 %v1116_v35 }
 0x7e5   : >> { %v1099_v36 = vpop.permute.xlu1 %1098 }
 0x7e6   : >> { %v1101_v37 = vsel %vm423_vm5, %v1099_v36, 0.0 }
 0x7e7   : >> { %1102 = vadd.xlane.f32.xlu1 %v1101_v37 }
 0x870   : >> { %v1118_v40 = vpop.xlane.xlu0 %1117 }
 0x871   : >> { %6666 = vrcp.f32 %v1118_v40 }
 0x872   : >> { %6668 = vrcp.f32 %v1124_v41 }
 0x874   : >> { %v1103_v45 = vpop.xlane.xlu1 %1102 }
 0x875   : >> { %6670 = vrcp.f32 %v1103_v45 }
 0x87b   : >> { %v6667_v42 = vpop.eup %6666 }
 0x87c   : >> { %v1120_v43 = vmul.f32 %v6667_v42, %v6661_v32  ;;  %v6669_v44 = vpop.eup %6668 }
 0x87e   : >> { %1283 = vrot.lane.b32.xlu1 %v1120_v43, %s6939_s19  ;;  %1203 = vrot.lane.b32.xlu0 %v1120_v43, %s6938_s18  ;;  %v1483_v52 = vrot.slane %v1120_v43, 1 }
 0x87f   : >> { %v6671_v46 = vpop.eup %6670 }
 0x880   : >> { %v1105_v47 = vmul.f32 %v6671_v46, %v6663_v33 }
 0x882   : >> { %1128 = vrot.lane.b32.xlu0 %v6669_v44, %s6940_s25 }
 0x8f0   : >> { %v1204_v48 = vpop.permute.xlu0 %1203  ;;  %v1284_v53 = vpop.permute.xlu1 %1283 }
 0x8f1   : >> { %v1206_v49 = vsub.f32 %v1105_v47, %v1204_v48 }
 0x8f3   : >> { %1208 = vrot.lane.b32.xlu0 %v1206_v49, %s6938_s18  ;;  %v1404_v51 = vrot.slane %v1206_v49, 1 }
 0x8f4   : >> { %v1129_v50 = vpop.permute.xlu0 %1128 }
 0x8f5   : >> { %6144 = vmatmul.mubr.msk.f32.vlgmr.msra.gmra.mrb[8].mxu1 %vm454_vm7, %v1129_v50 }
 0x8f7   : >> { %1405 = vrot.lane.b32.xlu0 %v1404_v51, %s6938_s18 }
 0x8fb   : >> { %1484 = vrot.lane.b32.xlu0 %v1483_v52, %s6939_s19 }
 0x919   : >> { %1286 = vxpose.xlu0.b32.start.end [1/1] (short) (narrow) %v1284_v53, 16 }
 0x946   : >> { %1679 = vrot.lane.b32.xlu0 %v1606_v58, %s6938_s18 }
 0x965   : >> { %v1209_v54 = vpop.permute.xlu0 %1208 }
 0x966   : >> { %6151 = vmatmul.mubr.msk.f32.vlgmr.msra.gmra.mrb[10].mxu0 %vm255_vm1, %v1209_v54 }
 0x967   : >> { %6451 = vmatpush3.bf16.msra.mxu0 %v7268_v1  ;;  %6162 = vmatprep.mubr.msk.f32.mxu0 %vm6936_vm0, %v6937_v8 }
 0x968   : >> { %6452 = vmatprep.subr.bf16.mxu0 %v6935_v5 }
 0x969   : >> { %v1406_v55 = vpop.permute.xlu0 %1405 }
 0x96a   : >> { %6163 = vmatmul.mubr.msk.f32.vlgmr.msra.gmra.mrb[12].mxu0 %vm255_vm1, %v1406_v55 }
 0x96b   : >> { %6174 = vmatprep.mubr.msk.f32.mxu0 %vm6936_vm0, %v6937_v8 }
 0x96d   : >> { %v1485_v56 = vpop.permute.xlu0 %1484 }
 0x96e   : >> { %1487 = vxpose.xlu1.b32.start.end [1/1] (short) (narrow) %v1485_v56, 16 }
 0x999   : >> { %v1302_v57 = vpop.trf.xlu0 }
 0x99a   : >> { %6155 = vmatprep.mubr.msk.f32.mxu1 %vm647_vm8, %v1302_v57 }
 0x99d   : >> { %v1303_v6 = vpop.trf.xlu0 }
 0x9c8   : >> { %v1198_v59 = vpop.f32.mrb[8].mxu1 }
 0x9c9   : >> { %v6145_v60 = vpop.f32.mrb[9].mxu1 }
 0x9ee   : >> { %v1503_v7 = vpop.trf.xlu1 }
 0x9f2   : >> { %v1504_v4 = vpop.trf.xlu1 }
 0xa39   : >> { %v1278_v61 = vpop.f32.mrb[10].mxu0 }
 0xa3a   : >> { %v1282_v62 = vmul.f32 %v1278_v61, %v1198_v59  ;;  %v6152_v63 = vpop.f32.mrb[11].mxu0 }
 0xa3c   : >> { %6153 = vmatprep.subr.msk.mxu1 %vm410_vm2, %v1282_v62 }
 0xa3d   : >> { %v1475_v12 = vpop.f32.mrb[12].mxu0  ;;  %6154 = vmatpush3.msk.msra.mxu1 %vm410_vm2, %v1282_v62 }
 0xa3e   : >> { %v1480_v15 = vrot.slane %v1475_v12, 7  ;;  %6156 = vmatmul.mubr.msk.f32.vlgmr.msra.gmra.mrb[10].mxu1 %vm647_vm8, %v1303_v6  ;;  %v6164_v16 = vpop.f32.mrb[13].mxu0  ;;  %v2276_v12 = vrot.slane %v7188_v9, 3 }
 0xa3f   : >> { %6167 = vmatprep.mubr.msk.f32.mxu1 %vm647_vm8, %v1503_v7 }
 0xa40   : >> { %v1482_v18 = vmul.f32 %v1480_v15, %v1198_v59 }
 0xa42   : >> { %v1520_v1 = vrot.slane %v1482_v18, 1 }
 0xa44   : >> { %6165 = vmatprep.subr.msk.mxu1 %vm410_vm2, %v1520_v1 }
 0xa45   : >> { %6166 = vmatpush3.msk.msra.mxu1 %vm410_vm2, %v1520_v1 }
 0xa46   : >> { %6168 = vmatmul.mubr.msk.f32.vlgmr.msra.gmra.mrb[12].mxu1 %vm647_vm8, %v1504_v4  ;;  %6455 = vmatprep.subr.bf16.mxu1 %v6935_v5 }
 0xa47   : >> { %6181 = vmatprep.mubr.msk.f32.mxu1 %vm6936_vm0, %v6937_v8 }
 0xb11   : >> { %v6157_v19 = vpop.f32.mrb[10].mxu1 }
 0xb12   : >> { %v7318_v21 = vadd.f32 %v6157_v19, %v7247_v10  ;;  %v1393_v22 = vpop.f32.mrb[11].mxu1 }
 0xb13   : >> { %v7321_v23 = vadd.f32 %v1393_v22, %v7250_v14 }
 0xb15   : >> { %v6453_v24 = vpack.c.bf16 %v7318_v21, %v7321_v23 }
 0xb17   : >> { %6454 = vmatpush3.bf16.msra.mxu0 %v6453_v24 }
 0xb18   : >> { %6184 = vmatprep.subr.mxu0 %v6937_v8 }
 0xb19   : >> { %v6169_v25 = vpop.f32.mrb[12].mxu1 }
 0xb1a   : >> { %v7327_v26 = vadd.f32 %v6169_v25, %v7256_v17  ;;  %v1595_v27 = vpop.f32.mrb[13].mxu1  ;;  %6175 = vmatmul.mubr.msk.f32.vlgmr.msra.gmra.mrb[14].mxu0 %vm255_vm1, %v1606_v58  ;;  %v1680_v17 = vpop.permute.xlu0 %1679 }
 0xb1b   : >> { %v7331_v10 = vadd.f32 %v1595_v27, %v7260_v2  ;;  %6185 = vmatpush3.msk.msra.mxu0 %vm457_vm6, %v7140_v0  ;;  %6186 = vmatprep.mubr.msk.f32.mxu0 %vm6936_vm0, %v6937_v8 }
 0xb1d   : >> { %v7339_v14 = vpack.c.bf16 %v7327_v26, %v7331_v10 }
 0xb1f   : >> { %6457 = vmatpush3.bf16.msra.mxu1 %v7339_v14 }
 0xb20   : >> { %6458 = vmatprep.subr.bf16.mxu1 %v6935_v5 }
 0xb22   : >> { %6182 = vmatmul.mubr.msk.f32.vlgmr.msra.gmra.mrb[14].mxu1 %vm255_vm1, %v1680_v17 }
 0xb23   : >> { %6460 = vmatpush3.bf16.msra.mxu1 %v6453_v24  ;;  %6193 = vmatprep.mubr.msk.f32.mxu1 %vm6936_vm0, %v6937_v8 }
 0xb24   : >> { %6461 = vmatprep.subr.bf16.mxu1 %v6935_v5 }
 0xbed   : >> { %v7347_v2 = vpop.f32.mrb[14].mxu0 }
 0xbee   : >> { %v6176_v28 = vpop.f32.mrb[15].mxu0 }
 0xbf5   : >> { %v7349_v29 = vpop.f32.mrb[14].mxu1 }
 0xbf6   : >> { %v1758_v30 = vrot.slane %v7349_v29, 7  ;;  %v6183_v31 = vpop.f32.mrb[15].mxu1 }
 0xbf8   : >> { %v1760_v32 = vsel %vm410_vm2, %v7347_v2, %v1758_v30 }
 0xbf9   : >> { %v1776_v33 = vsel %vm429_vm3, %v1760_v32, -inf  ;;  %v1761_v34 = vsel %vm412_vm4, %v1760_v32, -inf  ;;  %v5841_v47 = vmul.f32 -1.442695, %v1760_v32 }
 0xbfa   : >> { %1777 = vmax.xlane.f32.xlu1 %v1776_v33  ;;  %1762 = vmax.xlane.f32.xlu0 %v1761_v34 }
 0xc87   : >> { %v1778_v35 = vpop.xlane.xlu1 %1777  ;;  %v1763_v36 = vpop.xlane.xlu0 %1762 }
 0xc88   : >> { %v1779_v37 = vsub.f32 %v1760_v32, %v1778_v35  ;;  %v1764_v38 = vsub.f32 %v1760_v32, %v1763_v36 }
 0xc8a   : >> { %v1780_v39 = vmul.f32 1.442695, %v1779_v37  ;;  %v1765_v40 = vmul.f32 1.442695, %v1764_v38 }
 0xc8c   : >> { %6672 = vpow2.f32 %v1780_v39 }
 0xc8d   : >> { %6674 = vpow2.f32 %v1765_v40 }
 0xc8e   : >> { %6676 = vpow2.f32 %v5841_v47 }
 0xc96   : >> { %v6673_v41 = vpop.eup %6672 }
 0xc97   : >> { %v6675_v42 = vpop.eup %6674  ;;  %1783 = vrot.lane.b32.xlu1 %v6673_v41, %s6939_s19 }
 0xc98   : >> { %1768 = vrot.lane.b32.xlu0 %v6675_v42, %s6938_s18  ;;  %v6677_v48 = vpop.eup %6676 }
 0xc99   : >> { %v1794_v50 = vadd.f32 1.0, %v6677_v48 }
 0xd09   : >> { %v1784_v43 = vpop.permute.xlu1 %1783 }
 0xd0a   : >> { %v1769_v44 = vpop.permute.xlu0 %1768  ;;  %v1786_v45 = vsel %vm423_vm5, %v1784_v43, 0.0 }
 0xd0b   : >> { %1787 = vadd.xlane.f32.xlu1 %v1786_v45  ;;  %v1771_v46 = vsel %vm423_vm5, %v1769_v44, 0.0 }
 0xd0c   : >> { %1772 = vadd.xlane.f32.xlu0 %v1771_v46 }
 0xd98   : >> { %v1788_v49 = vpop.xlane.xlu1 %1787 }
 0xd99   : >> { %6678 = vrcp.f32 %v1788_v49  ;;  %v1773_v54 = vpop.xlane.xlu0 %1772 }
 0xd9a   : >> { %6680 = vrcp.f32 %v1794_v50 }
 0xd9b   : >> { %6682 = vrcp.f32 %v1773_v54 }
 0xda3   : >> { %v6679_v51 = vpop.eup %6678 }
 0xda4   : >> { %v1790_v52 = vmul.f32 %v6679_v51, %v6673_v41  ;;  %v6681_v53 = vpop.eup %6680 }
 0xda5   : >> { %v6683_v55 = vpop.eup %6682 }
 0xda6   : >> { %1873 = vrot.lane.b32.xlu1 %v1790_v52, %s6938_s18  ;;  %v1775_v56 = vmul.f32 %v6683_v55, %v6675_v42  ;;  %v2153_v61 = vrot.slane %v1790_v52, 1 }
 0xdaa   : >> { %1798 = vrot.lane.b32.xlu1 %v6681_v53, %s6940_s25 }
 0xe18   : >> { %v1874_v57 = vpop.permute.xlu1 %1873 }
 0xe19   : >> { %v1876_v58 = vsub.f32 %v1775_v56, %v1874_v57 }
 0xe1b   : >> { %v2074_v59 = vrot.slane %v1876_v58, 1  ;;  %1878 = vrot.lane.b32.xlu0 %v1876_v58, %s6938_s18 }
 0xe1c   : >> { %v1799_v60 = vpop.permute.xlu1 %1798 }
 0xe1d   : >> { %6187 = vmatmul.mubr.msk.f32.vlgmr.msra.gmra.mrb[16].mxu0 %vm454_vm7, %v1799_v60  ;;  %2075 = vrot.lane.b32.xlu1 %v2074_v59, %s6938_s18 }
 0xe21   : >> { %1953 = vrot.lane.b32.xlu1 %v1790_v52, %s6939_s19 }
 0xe25   : >> { %2154 = vrot.lane.b32.xlu1 %v2153_v61, %s6939_s19 }
 0xe8d   : >> { %v1879_v62 = vpop.permute.xlu0 %1878 }
 0xe8e   : >> { %6194 = vmatmul.mubr.msk.f32.vlgmr.msra.gmra.mrb[16].mxu1 %vm255_vm1, %v1879_v62 }
 0xe8f   : >> { %6463 = vmatpush3.bf16.msra.mxu1 %v7339_v14  ;;  %v2076_v63 = vpop.permute.xlu1 %2075  ;;  %6205 = vmatprep.mubr.msk.f32.mxu1 %vm6936_vm0, %v6937_v8 }
 0xe90   : >> { %6464 = vmatprep.subr.bf16.mxu1 %v6935_v5 }
 0xe92   : >> { %6206 = vmatmul.mubr.msk.f32.vlgmr.msra.gmra.mrb[18].mxu1 %vm255_vm1, %v2076_v63 }
 0xe93   : >> { %v1954_v6 = vpop.permute.xlu1 %1953  ;;  %6217 = vmatprep.mubr.msk.f32.mxu1 %vm6936_vm0, %v6937_v8 }
 0xe94   : >> { %1956 = vxpose.xlu0.b32.start.end [1/1] (short) (narrow) %v1954_v6, 16 }
 0xe97   : >> { %v2155_v7 = vpop.permute.xlu1 %2154 }
 0xe98   : >> { %2157 = vxpose.xlu1.b32.start.end [1/1] (short) (narrow) %v2155_v7, 16 }
 0xec1   : >> { %2349 = vrot.lane.b32.xlu0 %v2276_v12, %s6938_s18 }
 0xef0   : >> { %v1868_v15 = vpop.f32.mrb[16].mxu0 }
 0xef1   : >> { %v6188_v16 = vpop.f32.mrb[17].mxu0 }
 0xf14   : >> { %v1972_v18 = vpop.trf.xlu0 }
 0xf15   : >> { %6198 = vmatprep.mubr.msk.f32.mxu0 %vm647_vm8, %v1972_v18 }
 0xf18   : >> { %v1973_v22 = vpop.trf.xlu0  ;;  %v2173_v24 = vpop.trf.xlu1 }
 0xf1c   : >> { %v2174_v30 = vpop.trf.xlu1 }
 0xf61   : >> { %v1948_v1 = vpop.f32.mrb[16].mxu1 }
 0xf62   : >> { %v1952_v4 = vmul.f32 %v1948_v1, %v1868_v15  ;;  %v6195_v19 = vpop.f32.mrb[17].mxu1 }
 0xf64   : >> { %6196 = vmatprep.subr.msk.mxu0 %vm410_vm2, %v1952_v4 }
 0xf65   : >> { %v2145_v25 = vpop.f32.mrb[18].mxu1  ;;  %6197 = vmatpush3.msk.msra.mxu0 %vm410_vm2, %v1952_v4 }
 0xf66   : >> { %v2150_v27 = vrot.slane %v2145_v25, 7  ;;  %6199 = vmatmul.mubr.msk.f32.vlgmr.msra.gmra.mrb[18].mxu0 %vm647_vm8, %v1973_v22  ;;  %v6207_v14 = vpop.f32.mrb[19].mxu1 }
 0xf67   : >> { %6210 = vmatprep.mubr.msk.f32.mxu0 %vm647_vm8, %v2173_v24 }
 0xf68   : >> { %v2152_v17 = vmul.f32 %v2150_v27, %v1868_v15 }
 0xf6a   : >> { %v2190_v28 = vrot.slane %v2152_v17, 1  ;;  %v2946_v17 = vrot.slane %v7188_v9, 4 }
 0xf6c   : >> { %6208 = vmatprep.subr.msk.mxu0 %vm410_vm2, %v2190_v28 }
 0xf6d   : >> { %6209 = vmatpush3.msk.msra.mxu0 %vm410_vm2, %v2190_v28 }
 0xf6e   : >> { %6211 = vmatmul.mubr.msk.f32.vlgmr.msra.gmra.mrb[20].mxu0 %vm647_vm8, %v2174_v30  ;;  %6467 = vmatprep.subr.bf16.mxu0 %v6935_v5 }
 0xf6f   : >> { %6224 = vmatprep.mubr.msk.f32.mxu0 %vm6936_vm0, %v6937_v8 }
0x1039   : >> { %v6200_v31 = vpop.f32.mrb[18].mxu0 }
0x103a   : >> { %v7389_v32 = vadd.f32 %v6200_v31, %v7318_v21  ;;  %v2063_v33 = vpop.f32.mrb[19].mxu0 }
0x103b   : >> { %v7392_v34 = vadd.f32 %v2063_v33, %v7321_v23 }
0x103d   : >> { %v6465_v35 = vpack.c.bf16 %v7389_v32, %v7392_v34 }
0x103f   : >> { %6466 = vmatpush3.bf16.msra.mxu1 %v6465_v35 }
0x1040   : >> { %6227 = vmatprep.subr.mxu1 %v6937_v8 }
0x1041   : >> { %v6212_v36 = vpop.f32.mrb[20].mxu0 }
0x1042   : >> { %v7398_v37 = vadd.f32 %v6212_v36, %v7327_v26  ;;  %v2265_v38 = vpop.f32.mrb[21].mxu0  ;;  %6218 = vmatmul.mubr.msk.f32.vlgmr.msra.gmra.mrb[20].mxu1 %vm255_vm1, %v2276_v12  ;;  %v2350_v26 = vpop.permute.xlu0 %2349 }
0x1043   : >> { %v7402_v21 = vadd.f32 %v2265_v38, %v7331_v10  ;;  %6228 = vmatpush3.msk.msra.mxu1 %vm457_vm6, %v7140_v0  ;;  %6229 = vmatprep.mubr.msk.f32.mxu1 %vm6936_vm0, %v6937_v8 }
0x1045   : >> { %v7410_v23 = vpack.c.bf16 %v7398_v37, %v7402_v21 }
0x1047   : >> { %6469 = vmatpush3.bf16.msra.mxu0 %v7410_v23 }
0x1048   : >> { %6470 = vmatprep.subr.bf16.mxu0 %v6935_v5 }
0x104a   : >> { %6225 = vmatmul.mubr.msk.f32.vlgmr.msra.gmra.mrb[22].mxu0 %vm255_vm1, %v2350_v26 }
0x104b   : >> { %6472 = vmatpush3.bf16.msra.mxu0 %v6465_v35  ;;  %6236 = vmatprep.mubr.msk.f32.mxu0 %vm6936_vm0, %v6937_v8 }
0x104c   : >> { %6473 = vmatprep.subr.bf16.mxu0 %v6935_v5 }
0x1115   : >> { %v7418_v10 = vpop.f32.mrb[20].mxu1 }
0x1116   : >> { %v6219_v39 = vpop.f32.mrb[21].mxu1 }
0x111d   : >> { %v7420_v40 = vpop.f32.mrb[22].mxu0 }
0x111e   : >> { %v2428_v41 = vrot.slane %v7420_v40, 7  ;;  %v6226_v42 = vpop.f32.mrb[23].mxu0 }
0x1120   : >> { %v2430_v43 = vsel %vm410_vm2, %v7418_v10, %v2428_v41 }
0x1121   : >> { %v2446_v44 = vsel %vm429_vm3, %v2430_v43, -inf  ;;  %v2431_v45 = vsel %vm412_vm4, %v2430_v43, -inf  ;;  %v5854_v58 = vmul.f32 -1.442695, %v2430_v43 }
0x1122   : >> { %2447 = vmax.xlane.f32.xlu1 %v2446_v44  ;;  %2432 = vmax.xlane.f32.xlu0 %v2431_v45 }
0x11af   : >> { %v2448_v46 = vpop.xlane.xlu1 %2447  ;;  %v2433_v47 = vpop.xlane.xlu0 %2432 }
0x11b0   : >> { %v2449_v48 = vsub.f32 %v2430_v43, %v2448_v46  ;;  %v2434_v49 = vsub.f32 %v2430_v43, %v2433_v47 }
0x11b2   : >> { %v2450_v50 = vmul.f32 1.442695, %v2449_v48  ;;  %v2435_v51 = vmul.f32 1.442695, %v2434_v49 }
0x11b4   : >> { %6684 = vpow2.f32 %v2450_v50 }
0x11b5   : >> { %6686 = vpow2.f32 %v2435_v51 }
0x11b6   : >> { %6688 = vpow2.f32 %v5854_v58 }
0x11be   : >> { %v6685_v52 = vpop.eup %6684 }
0x11bf   : >> { %2453 = vrot.lane.b32.xlu1 %v6685_v52, %s6939_s19  ;;  %v6687_v53 = vpop.eup %6686 }
0x11c0   : >> { %v6689_v59 = vpop.eup %6688 }
0x11c1   : >> { %v2464_v61 = vadd.f32 1.0, %v6689_v59 }
0x11c3   : >> { %2438 = vrot.lane.b32.xlu1 %v6687_v53, %s6938_s18 }
0x1231   : >> { %v2454_v54 = vpop.permute.xlu1 %2453 }
0x1232   : >> { %v2456_v55 = vsel %vm423_vm5, %v2454_v54, 0.0 }
0x1233   : >> { %2457 = vadd.xlane.f32.xlu1 %v2456_v55 }
0x1235   : >> { %v2439_v56 = vpop.permute.xlu1 %2438 }
0x1236   : >> { %v2441_v57 = vsel %vm423_vm5, %v2439_v56, 0.0 }
0x1237   : >> { %2442 = vadd.xlane.f32.xlu0 %v2441_v57 }
0x12c0   : >> { %v2458_v60 = vpop.xlane.xlu1 %2457 }
0x12c1   : >> { %6690 = vrcp.f32 %v2458_v60 }
0x12c2   : >> { %6692 = vrcp.f32 %v2464_v61 }
0x12c4   : >> { %v2443_v7 = vpop.xlane.xlu0 %2442 }
0x12c5   : >> { %6694 = vrcp.f32 %v2443_v7 }
0x12cb   : >> { %v6691_v62 = vpop.eup %6690 }
0x12cc   : >> { %v2460_v63 = vmul.f32 %v6691_v62, %v6685_v52  ;;  %v6693_v6 = vpop.eup %6692 }
0x12ce   : >> { %2623 = vrot.lane.b32.xlu1 %v2460_v63, %s6939_s19  ;;  %2543 = vrot.lane.b32.xlu0 %v2460_v63, %s6938_s18  ;;  %v2823_v19 = vrot.slane %v2460_v63, 1 }
0x12cf   : >> { %v6695_v12 = vpop.eup %6694 }
0x12d0   : >> { %v2445_v15 = vmul.f32 %v6695_v12, %v6687_v53 }
0x12d2   : >> { %2468 = vrot.lane.b32.xlu0 %v6693_v6, %s6940_s25 }
0x1340   : >> { %v2544_v16 = vpop.permute.xlu0 %2543  ;;  %v2624_v22 = vpop.permute.xlu1 %2623 }
0x1341   : >> { %v2546_v18 = vsub.f32 %v2445_v15, %v2544_v16 }
0x1343   : >> { %2548 = vrot.lane.b32.xlu0 %v2546_v18, %s6938_s18  ;;  %v2744_v4 = vrot.slane %v2546_v18, 1 }
0x1344   : >> { %v2469_v1 = vpop.permute.xlu0 %2468 }
0x1345   : >> { %6230 = vmatmul.mubr.msk.f32.vlgmr.msra.gmra.mrb[22].mxu1 %vm454_vm7, %v2469_v1 }
0x1347   : >> { %2745 = vrot.lane.b32.xlu0 %v2744_v4, %s6938_s18 }
0x134b   : >> { %2824 = vrot.lane.b32.xlu0 %v2823_v19, %s6939_s19 }
0x1369   : >> { %2626 = vxpose.xlu0.b32.start.end [1/1] (short) (narrow) %v2624_v22, 16 }
0x1396   : >> { %3019 = vrot.lane.b32.xlu0 %v2946_v17, %s6938_s18 }
0x13b5   : >> { %v2549_v24 = vpop.permute.xlu0 %2548 }
0x13b6   : >> { %6237 = vmatmul.mubr.msk.f32.vlgmr.msra.gmra.mrb[24].mxu0 %vm255_vm1, %v2549_v24 }
0x13b7   : >> { %6475 = vmatpush3.bf16.msra.mxu0 %v7410_v23  ;;  %6248 = vmatprep.mubr.msk.f32.mxu0 %vm6936_vm0, %v6937_v8 }
0x13b8   : >> { %6476 = vmatprep.subr.bf16.mxu0 %v6935_v5 }
0x13b9   : >> { %v2746_v25 = vpop.permute.xlu0 %2745 }
0x13ba   : >> { %6249 = vmatmul.mubr.msk.f32.vlgmr.msra.gmra.mrb[26].mxu0 %vm255_vm1, %v2746_v25 }
0x13bb   : >> { %6260 = vmatprep.mubr.msk.f32.mxu0 %vm6936_vm0, %v6937_v8 }
0x13bd   : >> { %v2825_v27 = vpop.permute.xlu0 %2824 }
0x13be   : >> { %2827 = vxpose.xlu1.b32.start.end [1/1] (short) (narrow) %v2825_v27, 16 }
0x13e9   : >> { %v2642_v14 = vpop.trf.xlu0 }
0x13ea   : >> { %6241 = vmatprep.mubr.msk.f32.mxu1 %vm647_vm8, %v2642_v14 }
0x13ed   : >> { %v2643_v36 = vpop.trf.xlu0 }
0x1418   : >> { %v2538_v28 = vpop.f32.mrb[22].mxu1 }
0x1419   : >> { %v6231_v30 = vpop.f32.mrb[23].mxu1 }
0x143e   : >> { %v2843_v38 = vpop.trf.xlu1 }
0x1442   : >> { %v2844_v42 = vpop.trf.xlu1 }
0x1489   : >> { %v2618_v31 = vpop.f32.mrb[24].mxu0 }
0x148a   : >> { %v2622_v33 = vmul.f32 %v2618_v31, %v2538_v28  ;;  %v6238_v35 = vpop.f32.mrb[25].mxu0 }
0x148c   : >> { %6239 = vmatprep.subr.msk.mxu1 %vm410_vm2, %v2622_v33 }
0x148d   : >> { %v2815_v23 = vpop.f32.mrb[26].mxu0  ;;  %6240 = vmatpush3.msk.msra.mxu1 %vm410_vm2, %v2622_v33 }
0x148e   : >> { %v2820_v26 = vrot.slane %v2815_v23, 7  ;;  %6242 = vmatmul.mubr.msk.f32.vlgmr.msra.gmra.mrb[24].mxu1 %vm647_vm8, %v2643_v36  ;;  %v6250_v39 = vpop.f32.mrb[27].mxu0 }
0x148f   : >> { %6253 = vmatprep.mubr.msk.f32.mxu1 %vm647_vm8, %v2843_v38 }
0x1490   : >> { %v2822_v9 = vmul.f32 %v2820_v26, %v2538_v28 }
0x1492   : >> { %v2860_v41 = vrot.slane %v2822_v9, 1  ;;  %v7518_v9 = vld [vmem:[%s7179_s9] sm:$0xff] }
0x1494   : >> { %6251 = vmatprep.subr.msk.mxu1 %vm410_vm2, %v2860_v41 }
0x1495   : >> { %6252 = vmatpush3.msk.msra.mxu1 %vm410_vm2, %v2860_v41  ;;  %v3616_v41 = vrot.slane %v7518_v9, 5 }
0x1496   : >> { %6254 = vmatmul.mubr.msk.f32.vlgmr.msra.gmra.mrb[26].mxu1 %vm647_vm8, %v2844_v42  ;;  %6479 = vmatprep.subr.bf16.mxu1 %v6935_v5 }
0x1497   : >> { %6267 = vmatprep.mubr.msk.f32.mxu1 %vm6936_vm0, %v6937_v8 }
0x1561   : >> { %v6243_v43 = vpop.f32.mrb[24].mxu1 }
0x1562   : >> { %v7460_v44 = vadd.f32 %v6243_v43, %v7389_v32  ;;  %v2733_v45 = vpop.f32.mrb[25].mxu1 }
0x1563   : >> { %v7463_v46 = vadd.f32 %v2733_v45, %v7392_v34 }
0x1565   : >> { %v6477_v47 = vpack.c.bf16 %v7460_v44, %v7463_v46 }
0x1567   : >> { %6478 = vmatpush3.bf16.msra.mxu0 %v6477_v47 }
0x1568   : >> { %6270 = vmatprep.subr.mxu0 %v6937_v8 }
0x1569   : >> { %v6255_v48 = vpop.f32.mrb[26].mxu1 }
0x156a   : >> { %v7469_v49 = vadd.f32 %v6255_v48, %v7398_v37  ;;  %v2935_v50 = vpop.f32.mrb[27].mxu1  ;;  %6261 = vmatmul.mubr.msk.f32.vlgmr.msra.gmra.mrb[28].mxu0 %vm255_vm1, %v2946_v17  ;;  %v3020_v37 = vpop.permute.xlu0 %3019 }
0x156b   : >> { %v7473_v32 = vadd.f32 %v2935_v50, %v7402_v21  ;;  %6271 = vmatpush3.msk.msra.mxu0 %vm457_vm6, %v7140_v0  ;;  %6272 = vmatprep.mubr.msk.f32.mxu0 %vm6936_vm0, %v6937_v8 }
0x156d   : >> { %v7481_v34 = vpack.c.bf16 %v7469_v49, %v7473_v32 }
0x156f   : >> { %6481 = vmatpush3.bf16.msra.mxu1 %v7481_v34 }
0x1570   : >> { %6482 = vmatprep.subr.bf16.mxu1 %v6935_v5 }
0x1572   : >> { %6268 = vmatmul.mubr.msk.f32.vlgmr.msra.gmra.mrb[28].mxu1 %vm255_vm1, %v3020_v37 }
0x1573   : >> { %6484 = vmatpush3.bf16.msra.mxu1 %v6477_v47  ;;  %6279 = vmatprep.mubr.msk.f32.mxu1 %vm6936_vm0, %v6937_v8 }
0x1574   : >> { %6485 = vmatprep.subr.bf16.mxu1 %v6935_v5 }
0x163d   : >> { %v7489_v21 = vpop.f32.mrb[28].mxu0 }
0x163e   : >> { %v6262_v51 = vpop.f32.mrb[29].mxu0 }
0x1645   : >> { %v7491_v52 = vpop.f32.mrb[28].mxu1 }
0x1646   : >> { %v3098_v53 = vrot.slane %v7491_v52, 7  ;;  %v6269_v54 = vpop.f32.mrb[29].mxu1 }
0x1648   : >> { %v3100_v55 = vsel %vm410_vm2, %v7489_v21, %v3098_v53 }
0x1649   : >> { %v3116_v56 = vsel %vm429_vm3, %v3100_v55, -inf  ;;  %v3101_v57 = vsel %vm412_vm4, %v3100_v55, -inf  ;;  %v5867_v1 = vmul.f32 -1.442695, %v3100_v55 }
0x164a   : >> { %3117 = vmax.xlane.f32.xlu1 %v3116_v56  ;;  %3102 = vmax.xlane.f32.xlu0 %v3101_v57 }
0x16d7   : >> { %v3118_v58 = vpop.xlane.xlu1 %3117  ;;  %v3103_v59 = vpop.xlane.xlu0 %3102 }
0x16d8   : >> { %v3119_v60 = vsub.f32 %v3100_v55, %v3118_v58  ;;  %v3104_v61 = vsub.f32 %v3100_v55, %v3103_v59 }
0x16da   : >> { %v3120_v62 = vmul.f32 1.442695, %v3119_v60  ;;  %v3105_v63 = vmul.f32 1.442695, %v3104_v61 }
0x16dc   : >> { %6696 = vpow2.f32 %v3120_v62 }
0x16dd   : >> { %6698 = vpow2.f32 %v3105_v63 }
0x16de   : >> { %6700 = vpow2.f32 %v5867_v1 }
0x16e6   : >> { %v6697_v6 = vpop.eup %6696 }
0x16e7   : >> { %v6699_v7 = vpop.eup %6698  ;;  %3123 = vrot.lane.b32.xlu1 %v6697_v6, %s6939_s19 }
0x16e8   : >> { %3108 = vrot.lane.b32.xlu0 %v6699_v7, %s6938_s18  ;;  %v6701_v4 = vpop.eup %6700 }
0x16e9   : >> { %v3134_v22 = vadd.f32 1.0, %v6701_v4 }
0x1759   : >> { %v3124_v12 = vpop.permute.xlu1 %3123 }
0x175a   : >> { %v3109_v15 = vpop.permute.xlu0 %3108  ;;  %v3126_v16 = vsel %vm423_vm5, %v3124_v12, 0.0 }
0x175b   : >> { %3127 = vadd.xlane.f32.xlu1 %v3126_v16  ;;  %v3111_v18 = vsel %vm423_vm5, %v3109_v15, 0.0 }
0x175c   : >> { %3112 = vadd.xlane.f32.xlu0 %v3111_v18 }
0x17e8   : >> { %v3128_v19 = vpop.xlane.xlu1 %3127 }
0x17e9   : >> { %6702 = vrcp.f32 %v3128_v19  ;;  %v3113_v14 = vpop.xlane.xlu0 %3112 }
0x17ea   : >> { %6704 = vrcp.f32 %v3134_v22 }
0x17eb   : >> { %6706 = vrcp.f32 %v3113_v14 }
0x17f3   : >> { %v6703_v24 = vpop.eup %6702 }
0x17f4   : >> { %v3130_v25 = vmul.f32 %v6703_v24, %v6697_v6  ;;  %v6705_v27 = vpop.eup %6704 }
0x17f5   : >> { %v6707_v17 = vpop.eup %6706 }
0x17f6   : >> { %3213 = vrot.lane.b32.xlu1 %v3130_v25, %s6938_s18  ;;  %v3115_v28 = vmul.f32 %v6707_v17, %v6699_v7  ;;  %v3493_v36 = vrot.slane %v3130_v25, 1 }
0x17fa   : >> { %3138 = vrot.lane.b32.xlu1 %v6705_v27, %s6940_s25 }
0x1868   : >> { %v3214_v30 = vpop.permute.xlu1 %3213 }
0x1869   : >> { %v3216_v31 = vsub.f32 %v3115_v28, %v3214_v30 }
0x186b   : >> { %v3414_v33 = vrot.slane %v3216_v31, 1  ;;  %3218 = vrot.lane.b32.xlu0 %v3216_v31, %s6938_s18 }
0x186c   : >> { %v3139_v35 = vpop.permute.xlu1 %3138 }
0x186d   : >> { %6273 = vmatmul.mubr.msk.f32.vlgmr.msra.gmra.mrb[30].mxu0 %vm454_vm7, %v3139_v35  ;;  %3415 = vrot.lane.b32.xlu1 %v3414_v33, %s6938_s18 }
0x1871   : >> { %3293 = vrot.lane.b32.xlu1 %v3130_v25, %s6939_s19 }
0x1875   : >> { %3494 = vrot.lane.b32.xlu1 %v3493_v36, %s6939_s19 }
0x18dd   : >> { %v3219_v38 = vpop.permute.xlu0 %3218 }
0x18de   : >> { %6280 = vmatmul.mubr.msk.f32.vlgmr.msra.gmra.mrb[30].mxu1 %vm255_vm1, %v3219_v38 }
0x18df   : >> { %6487 = vmatpush3.bf16.msra.mxu1 %v7481_v34  ;;  %v3416_v23 = vpop.permute.xlu1 %3415  ;;  %6291 = vmatprep.mubr.msk.f32.mxu1 %vm6936_vm0, %v6937_v8 }
0x18e0   : >> { %6488 = vmatprep.subr.bf16.mxu1 %v6935_v5 }
0x18e2   : >> { %6292 = vmatmul.mubr.msk.f32.vlgmr.msra.gmra.mrb[32].mxu1 %vm255_vm1, %v3416_v23 }
0x18e3   : >> { %v3294_v26 = vpop.permute.xlu1 %3293  ;;  %6303 = vmatprep.mubr.msk.f32.mxu1 %vm6936_vm0, %v6937_v8 }
0x18e4   : >> { %3296 = vxpose.xlu1.b32.start.end [1/1] (short) (narrow) %v3294_v26, 16 }
0x18e7   : >> { %v3495_v39 = vpop.permute.xlu1 %3494 }
0x18e8   : >> { %3497 = vxpose.xlu0.b32.start.end [1/1] (short) (narrow) %v3495_v39, 16 }
0x1915   : >> { %3689 = vrot.lane.b32.xlu0 %v3616_v41, %s6938_s18 }
0x1940   : >> { %v3208_v42 = vpop.f32.mrb[30].mxu0 }
0x1941   : >> { %v6274_v43 = vpop.f32.mrb[31].mxu0 }
0x1964   : >> { %v3312_v45 = vpop.trf.xlu1 }
0x1965   : >> { %6284 = vmatprep.mubr.msk.f32.mxu0 %vm647_vm8, %v3312_v45 }
0x1968   : >> { %v3313_v34 = vpop.trf.xlu1  ;;  %v3513_v37 = vpop.trf.xlu0 }
0x196c   : >> { %v3514_v57 = vpop.trf.xlu0 }
0x19b1   : >> { %v3288_v47 = vpop.f32.mrb[30].mxu1 }
0x19b2   : >> { %v3292_v48 = vmul.f32 %v3288_v47, %v3208_v42  ;;  %v6281_v50 = vpop.f32.mrb[31].mxu1 }
0x19b4   : >> { %6282 = vmatprep.subr.msk.mxu0 %vm410_vm2, %v3292_v48 }
0x19b5   : >> { %v3485_v51 = vpop.f32.mrb[32].mxu1  ;;  %6283 = vmatpush3.msk.msra.mxu0 %vm410_vm2, %v3292_v48 }
0x19b6   : >> { %v3490_v53 = vrot.slane %v3485_v51, 7  ;;  %6285 = vmatmul.mubr.msk.f32.vlgmr.msra.gmra.mrb[32].mxu0 %vm647_vm8, %v3313_v34  ;;  %v6293_v54 = vpop.f32.mrb[33].mxu1 }
0x19b7   : >> { %6296 = vmatprep.mubr.msk.f32.mxu0 %vm647_vm8, %v3513_v37 }
0x19b8   : >> { %v3492_v55 = vmul.f32 %v3490_v53, %v3208_v42 }
0x19ba   : >> { %v3530_v56 = vrot.slane %v3492_v55, 1 }
0x19bc   : >> { %6294 = vmatprep.subr.msk.mxu0 %vm410_vm2, %v3530_v56 }
0x19bd   : >> { %6295 = vmatpush3.msk.msra.mxu0 %vm410_vm2, %v3530_v56 }
0x19be   : >> { %6297 = vmatmul.mubr.msk.f32.vlgmr.msra.gmra.mrb[34].mxu0 %vm647_vm8, %v3514_v57  ;;  %6491 = vmatprep.subr.bf16.mxu0 %v6935_v5 }
0x19bf   : >> { %6310 = vmatprep.mubr.msk.f32.mxu0 %vm6936_vm0, %v6937_v8 }
0x1a89   : >> { %v6286_v58 = vpop.f32.mrb[32].mxu0 }
0x1a8a   : >> { %v7534_v59 = vadd.f32 %v6286_v58, %v7460_v44  ;;  %v3403_v60 = vpop.f32.mrb[33].mxu0 }
0x1a8b   : >> { %v7537_v61 = vadd.f32 %v3403_v60, %v7463_v46  ;;  %v4286_v60 = vrot.slane %v7518_v9, 6 }
0x1a8d   : >> { %v6489_v62 = vpack.c.bf16 %v7534_v59, %v7537_v61 }
0x1a8f   : >> { %6490 = vmatpush3.bf16.msra.mxu1 %v6489_v62 }
0x1a90   : >> { %6313 = vmatprep.subr.mxu1 %v6937_v8 }
0x1a91   : >> { %v6298_v63 = vpop.f32.mrb[34].mxu0 }
0x1a92   : >> { %v7543_v6 = vadd.f32 %v6298_v63, %v7469_v49  ;;  %v3605_v7 = vpop.f32.mrb[35].mxu0  ;;  %6304 = vmatmul.mubr.msk.f32.vlgmr.msra.gmra.mrb[34].mxu1 %vm255_vm1, %v3616_v41  ;;  %v3690_v49 = vpop.permute.xlu0 %3689 }
0x1a93   : >> { %v7547_v44 = vadd.f32 %v3605_v7, %v7473_v32  ;;  %6314 = vmatpush3.msk.msra.mxu1 %vm457_vm6, %v7140_v0  ;;  %6315 = vmatprep.mubr.msk.f32.mxu1 %vm6936_vm0, %v6937_v8 }
0x1a95   : >> { %v7555_v46 = vpack.c.bf16 %v7543_v6, %v7547_v44 }
0x1a97   : >> { %6493 = vmatpush3.bf16.msra.mxu0 %v7555_v46 }
0x1a98   : >> { %6494 = vmatprep.subr.bf16.mxu0 %v6935_v5 }
0x1a9a   : >> { %6311 = vmatmul.mubr.msk.f32.vlgmr.msra.gmra.mrb[36].mxu0 %vm255_vm1, %v3690_v49 }
0x1a9b   : >> { %6496 = vmatpush3.bf16.msra.mxu0 %v6489_v62  ;;  %6322 = vmatprep.mubr.msk.f32.mxu0 %vm6936_vm0, %v6937_v8 }
0x1a9c   : >> { %6497 = vmatprep.subr.bf16.mxu0 %v6935_v5 }
0x1b65   : >> { %v7563_v32 = vpop.f32.mrb[34].mxu1 }
0x1b66   : >> { %v6305_v12 = vpop.f32.mrb[35].mxu1 }
0x1b6d   : >> { %v7565_v15 = vpop.f32.mrb[36].mxu0 }
0x1b6e   : >> { %v3768_v16 = vrot.slane %v7565_v15, 7  ;;  %v6312_v18 = vpop.f32.mrb[37].mxu0 }
0x1b70   : >> { %v3770_v1 = vsel %vm410_vm2, %v7563_v32, %v3768_v16 }
0x1b71   : >> { %v3786_v4 = vsel %vm429_vm3, %v3770_v1, -inf  ;;  %v3771_v19 = vsel %vm412_vm4, %v3770_v1, -inf  ;;  %v5880_v38 = vmul.f32 -1.442695, %v3770_v1 }
0x1b72   : >> { %3787 = vmax.xlane.f32.xlu1 %v3786_v4  ;;  %3772 = vmax.xlane.f32.xlu0 %v3771_v19 }
0x1bff   : >> { %v3788_v22 = vpop.xlane.xlu1 %3787  ;;  %v3773_v24 = vpop.xlane.xlu0 %3772 }
0x1c00   : >> { %v3789_v25 = vsub.f32 %v3770_v1, %v3788_v22  ;;  %v3774_v27 = vsub.f32 %v3770_v1, %v3773_v24 }
0x1c02   : >> { %v3790_v14 = vmul.f32 1.442695, %v3789_v25  ;;  %v3775_v17 = vmul.f32 1.442695, %v3774_v27 }
0x1c04   : >> { %6708 = vpow2.f32 %v3790_v14 }
0x1c05   : >> { %6710 = vpow2.f32 %v3775_v17 }
0x1c06   : >> { %6712 = vpow2.f32 %v5880_v38 }
0x1c0e   : >> { %v6709_v28 = vpop.eup %6708 }
0x1c0f   : >> { %3793 = vrot.lane.b32.xlu1 %v6709_v28, %s6939_s19  ;;  %v6711_v30 = vpop.eup %6710 }
0x1c10   : >> { %v6713_v23 = vpop.eup %6712 }
0x1c11   : >> { %v3804_v39 = vadd.f32 1.0, %v6713_v23 }
0x1c13   : >> { %3778 = vrot.lane.b32.xlu1 %v6711_v30, %s6938_s18 }
0x1c81   : >> { %v3794_v31 = vpop.permute.xlu1 %3793 }
0x1c82   : >> { %v3796_v33 = vsel %vm423_vm5, %v3794_v31, 0.0 }
0x1c83   : >> { %3797 = vadd.xlane.f32.xlu1 %v3796_v33 }
0x1c85   : >> { %v3779_v35 = vpop.permute.xlu1 %3778 }
0x1c86   : >> { %v3781_v36 = vsel %vm423_vm5, %v3779_v35, 0.0 }
0x1c87   : >> { %3782 = vadd.xlane.f32.xlu0 %v3781_v36 }
0x1d10   : >> { %v3798_v26 = vpop.xlane.xlu1 %3797 }
0x1d11   : >> { %6714 = vrcp.f32 %v3798_v26 }
0x1d12   : >> { %6716 = vrcp.f32 %v3804_v39 }
0x1d14   : >> { %v3783_v45 = vpop.xlane.xlu0 %3782 }
0x1d15   : >> { %6718 = vrcp.f32 %v3783_v45 }
0x1d1b   : >> { %v6715_v41 = vpop.eup %6714 }
0x1d1c   : >> { %v3800_v42 = vmul.f32 %v6715_v41, %v6709_v28  ;;  %v6717_v43 = vpop.eup %6716 }
0x1d1e   : >> { %3963 = vrot.lane.b32.xlu1 %v3800_v42, %s6939_s19  ;;  %3883 = vrot.lane.b32.xlu0 %v3800_v42, %s6938_s18  ;;  %v4163_v53 = vrot.slane %v3800_v42, 1 }
0x1d1f   : >> { %v6719_v47 = vpop.eup %6718 }
0x1d20   : >> { %v3785_v48 = vmul.f32 %v6719_v47, %v6711_v30 }
0x1d22   : >> { %3808 = vrot.lane.b32.xlu0 %v6717_v43, %s6940_s25 }
0x1d90   : >> { %v3884_v50 = vpop.permute.xlu0 %3883  ;;  %v3964_v54 = vpop.permute.xlu1 %3963 }
0x1d91   : >> { %v3886_v34 = vsub.f32 %v3785_v48, %v3884_v50 }
0x1d93   : >> { %3888 = vrot.lane.b32.xlu0 %v3886_v34, %s6938_s18  ;;  %v4084_v51 = vrot.slane %v3886_v34, 1 }
0x1d94   : >> { %v3809_v37 = vpop.permute.xlu0 %3808 }
0x1d95   : >> { %6316 = vmatmul.mubr.msk.f32.vlgmr.msra.gmra.mrb[36].mxu1 %vm454_vm7, %v3809_v37 }
0x1d97   : >> { %4085 = vrot.lane.b32.xlu0 %v4084_v51, %s6938_s18 }
0x1d9b   : >> { %4164 = vrot.lane.b32.xlu0 %v4163_v53, %s6939_s19 }
0x1db9   : >> { %3966 = vxpose.xlu0.b32.start.end [1/1] (short) (narrow) %v3964_v54, 16 }
0x1de6   : >> { %4359 = vrot.lane.b32.xlu0 %v4286_v60, %s6938_s18 }
0x1e05   : >> { %v3889_v55 = vpop.permute.xlu0 %3888 }
0x1e06   : >> { %6323 = vmatmul.mubr.msk.f32.vlgmr.msra.gmra.mrb[38].mxu0 %vm255_vm1, %v3889_v55 }
0x1e07   : >> { %6499 = vmatpush3.bf16.msra.mxu0 %v7555_v46  ;;  %6334 = vmatprep.mubr.msk.f32.mxu0 %vm6936_vm0, %v6937_v8 }
0x1e08   : >> { %6500 = vmatprep.subr.bf16.mxu0 %v6935_v5 }
0x1e09   : >> { %v4086_v56 = vpop.permute.xlu0 %4085 }
0x1e0a   : >> { %6335 = vmatmul.mubr.msk.f32.vlgmr.msra.gmra.mrb[40].mxu0 %vm255_vm1, %v4086_v56 }
0x1e0b   : >> { %6346 = vmatprep.mubr.msk.f32.mxu0 %vm6936_vm0, %v6937_v8 }
0x1e0d   : >> { %v4165_v57 = vpop.permute.xlu0 %4164 }
0x1e0e   : >> { %4167 = vxpose.xlu1.b32.start.end [1/1] (short) (narrow) %v4165_v57, 16 }
0x1e39   : >> { %v3982_v58 = vpop.trf.xlu0 }
0x1e3a   : >> { %6327 = vmatprep.mubr.msk.f32.mxu1 %vm647_vm8, %v3982_v58 }
0x1e3d   : >> { %v3983_v12 = vpop.trf.xlu0 }
0x1e68   : >> { %v3878_v62 = vpop.f32.mrb[36].mxu1 }
0x1e69   : >> { %v6317_v63 = vpop.f32.mrb[37].mxu1 }
0x1e8e   : >> { %v4183_v16 = vpop.trf.xlu1 }
0x1e92   : >> { %v4184_v24 = vpop.trf.xlu1 }
0x1ed9   : >> { %v3958_v7 = vpop.f32.mrb[38].mxu0 }
0x1eda   : >> { %v3962_v46 = vmul.f32 %v3958_v7, %v3878_v62  ;;  %v6324_v49 = vpop.f32.mrb[39].mxu0 }
0x1edc   : >> { %6325 = vmatprep.subr.msk.mxu1 %vm410_vm2, %v3962_v46 }
0x1edd   : >> { %v4155_v18 = vpop.f32.mrb[40].mxu0  ;;  %6326 = vmatpush3.msk.msra.mxu1 %vm410_vm2, %v3962_v46 }
0x1ede   : >> { %v4160_v1 = vrot.slane %v4155_v18, 7  ;;  %6328 = vmatmul.mubr.msk.f32.vlgmr.msra.gmra.mrb[38].mxu1 %vm647_vm8, %v3983_v12  ;;  %v6336_v4 = vpop.f32.mrb[41].mxu0 }
0x1edf   : >> { %6339 = vmatprep.mubr.msk.f32.mxu1 %vm647_vm8, %v4183_v16 }
0x1ee0   : >> { %v4162_v19 = vmul.f32 %v4160_v1, %v3878_v62 }
0x1ee2   : >> { %v4200_v22 = vrot.slane %v4162_v19, 1 }
0x1ee4   : >> { %6337 = vmatprep.subr.msk.mxu1 %vm410_vm2, %v4200_v22 }
0x1ee5   : >> { %6338 = vmatpush3.msk.msra.mxu1 %vm410_vm2, %v4200_v22 }
0x1ee6   : >> { %6340 = vmatmul.mubr.msk.f32.vlgmr.msra.gmra.mrb[40].mxu1 %vm647_vm8, %v4184_v24  ;;  %6503 = vmatprep.subr.bf16.mxu1 %v6935_v5 }
0x1ee7   : >> { %6353 = vmatprep.mubr.msk.f32.mxu1 %vm6936_vm0, %v6937_v8 }
0x1fb1   : >> { %v6329_v25 = vpop.f32.mrb[38].mxu1 }
0x1fb2   : >> { %v7605_v27 = vadd.f32 %v6329_v25, %v7534_v59  ;;  %v4073_v14 = vpop.f32.mrb[39].mxu1 }
0x1fb3   : >> { %v7608_v17 = vadd.f32 %v4073_v14, %v7537_v61 }
0x1fb5   : >> { %v6501_v28 = vpack.c.bf16 %v7605_v27, %v7608_v17 }
0x1fb7   : >> { %6502 = vmatpush3.bf16.msra.mxu0 %v6501_v28 }
0x1fb8   : >> { %6356 = vmatprep.subr.mxu0 %v6937_v8 }
0x1fb9   : >> { %v6341_v30 = vpop.f32.mrb[40].mxu1 }
0x1fba   : >> { %v7614_v31 = vadd.f32 %v6341_v30, %v7543_v6  ;;  %v4275_v33 = vpop.f32.mrb[41].mxu1  ;;  %6347 = vmatmul.mubr.msk.f32.vlgmr.msra.gmra.mrb[42].mxu0 %vm255_vm1, %v4286_v60  ;;  %v4360_v6 = vpop.permute.xlu0 %4359 }
0x1fbb   : >> { %v7618_v59 = vadd.f32 %v4275_v33, %v7547_v44  ;;  %6357 = vmatpush3.msk.msra.mxu0 %vm457_vm6, %v7140_v0  ;;  %6358 = vmatprep.mubr.msk.f32.mxu0 %vm6936_vm0, %v6937_v8 }
0x1fbd   : >> { %v7626_v61 = vpack.c.bf16 %v7614_v31, %v7618_v59 }
0x1fbf   : >> { %6505 = vmatpush3.bf16.msra.mxu1 %v7626_v61 }
0x1fc0   : >> { %6506 = vmatprep.subr.bf16.mxu1 %v6935_v5 }
0x1fc2   : >> { %6354 = vmatmul.mubr.msk.f32.vlgmr.msra.gmra.mrb[42].mxu1 %vm255_vm1, %v4360_v6 }
0x1fc3   : >> { %6508 = vmatpush3.bf16.msra.mxu1 %v6501_v28  ;;  %6365 = vmatprep.mubr.msk.f32.mxu1 %vm6936_vm0, %v6937_v8  ;;  %v4956_v28 = vrot.slane %v7518_v9, 7 }
0x1fc4   : >> { %6509 = vmatprep.subr.bf16.mxu1 %v6935_v5 }
0x208d   : >> { %v7634_v44 = vpop.f32.mrb[42].mxu0 }
0x208e   : >> { %v6348_v35 = vpop.f32.mrb[43].mxu0 }
0x2095   : >> { %v7636_v36 = vpop.f32.mrb[42].mxu1 }
0x2096   : >> { %v4438_v38 = vrot.slane %v7636_v36, 7  ;;  %v6355_v23 = vpop.f32.mrb[43].mxu1 }
0x2098   : >> { %v4440_v26 = vsel %vm410_vm2, %v7634_v44, %v4438_v38 }
0x2099   : >> { %v4456_v39 = vsel %vm429_vm3, %v4440_v26, -inf  ;;  %v4441_v41 = vsel %vm412_vm4, %v4440_v26, -inf  ;;  %v5893_v56 = vmul.f32 -1.442695, %v4440_v26 }
0x209a   : >> { %4457 = vmax.xlane.f32.xlu1 %v4456_v39  ;;  %4442 = vmax.xlane.f32.xlu0 %v4441_v41 }
0x2127   : >> { %v4458_v42 = vpop.xlane.xlu1 %4457  ;;  %v4443_v43 = vpop.xlane.xlu0 %4442 }
0x2128   : >> { %v4459_v45 = vsub.f32 %v4440_v26, %v4458_v42  ;;  %v4444_v47 = vsub.f32 %v4440_v26, %v4443_v43 }
0x212a   : >> { %v4460_v48 = vmul.f32 1.442695, %v4459_v45  ;;  %v4445_v50 = vmul.f32 1.442695, %v4444_v47 }
0x212c   : >> { %6720 = vpow2.f32 %v4460_v48 }
0x212d   : >> { %6722 = vpow2.f32 %v4445_v50 }
0x212e   : >> { %6724 = vpow2.f32 %v5893_v56 }
0x2136   : >> { %v6721_v34 = vpop.eup %6720 }
0x2137   : >> { %v6723_v37 = vpop.eup %6722  ;;  %4463 = vrot.lane.b32.xlu1 %v6721_v34, %s6939_s19 }
0x2138   : >> { %4448 = vrot.lane.b32.xlu0 %v6723_v37, %s6938_s18  ;;  %v6725_v57 = vpop.eup %6724 }
0x2139   : >> { %v4474_v60 = vadd.f32 1.0, %v6725_v57 }
0x21a9   : >> { %v4464_v51 = vpop.permute.xlu1 %4463 }
0x21aa   : >> { %v4466_v53 = vsel %vm423_vm5, %v4464_v51, 0.0  ;;  %v4449_v54 = vpop.permute.xlu0 %4448 }
0x21ab   : >> { %v4451_v55 = vsel %vm423_vm5, %v4449_v54, 0.0  ;;  %4467 = vadd.xlane.f32.xlu1 %v4466_v53 }
0x21ac   : >> { %4452 = vadd.xlane.f32.xlu0 %v4451_v55 }
0x2238   : >> { %v4468_v58 = vpop.xlane.xlu1 %4467 }
0x2239   : >> { %6726 = vrcp.f32 %v4468_v58  ;;  %v4453_v46 = vpop.xlane.xlu0 %4452 }
0x223a   : >> { %6728 = vrcp.f32 %v4474_v60 }
0x223b   : >> { %6730 = vrcp.f32 %v4453_v46 }
0x2243   : >> { %v6727_v62 = vpop.eup %6726 }
0x2244   : >> { %v4470_v63 = vmul.f32 %v6727_v62, %v6721_v34  ;;  %v6729_v7 = vpop.eup %6728 }
0x2245   : >> { %v6731_v49 = vpop.eup %6730 }
0x2246   : >> { %4553 = vrot.lane.b32.xlu1 %v4470_v63, %s6938_s18  ;;  %v4455_v12 = vmul.f32 %v6731_v49, %v6723_v37  ;;  %v4833_v19 = vrot.slane %v4470_v63, 1 }
0x224a   : >> { %4478 = vrot.lane.b32.xlu1 %v6729_v7, %s6940_s25 }
0x22b8   : >> { %v4554_v16 = vpop.permute.xlu1 %4553 }
0x22b9   : >> { %v4556_v18 = vsub.f32 %v4455_v12, %v4554_v16 }
0x22bb   : >> { %v4754_v1 = vrot.slane %v4556_v18, 1  ;;  %4558 = vrot.lane.b32.xlu0 %v4556_v18, %s6938_s18 }
0x22bc   : >> { %v4479_v4 = vpop.permute.xlu1 %4478 }
0x22bd   : >> { %6359 = vmatmul.mubr.msk.f32.vlgmr.msra.gmra.mrb[44].mxu0 %vm454_vm7, %v4479_v4  ;;  %4755 = vrot.lane.b32.xlu1 %v4754_v1, %s6938_s18 }
0x22c1   : >> { %4633 = vrot.lane.b32.xlu1 %v4470_v63, %s6939_s19 }
0x22c5   : >> { %4834 = vrot.lane.b32.xlu1 %v4833_v19, %s6939_s19 }
0x232d   : >> { %v4559_v22 = vpop.permute.xlu0 %4558 }
0x232e   : >> { %6366 = vmatmul.mubr.msk.f32.vlgmr.msra.gmra.mrb[44].mxu1 %vm255_vm1, %v4559_v22 }
0x232f   : >> { %6511 = vmatpush3.bf16.msra.mxu1 %v7626_v61  ;;  %v4756_v24 = vpop.permute.xlu1 %4755  ;;  %6377 = vmatprep.mubr.msk.f32.mxu1 %vm6936_vm0, %v6937_v8 }
0x2330   : >> { %6512 = vmatprep.subr.bf16.mxu1 %v6935_v5 }
0x2332   : >> { %6378 = vmatmul.mubr.msk.f32.vlgmr.msra.gmra.mrb[46].mxu1 %vm255_vm1, %v4756_v24 }
0x2333   : >> { %v4634_v25 = vpop.permute.xlu1 %4633  ;;  %6389 = vmatprep.mubr.msk.f32.mxu1 %vm6936_vm0, %v6937_v8 }
0x2334   : >> { %4636 = vxpose.xlu1.b32.start.end [1/1] (short) (narrow) %v4634_v25, 16 }
0x2337   : >> { %v4835_v14 = vpop.permute.xlu1 %4834 }
0x2338   : >> { %4837 = vxpose.xlu0.b32.start.end [1/1] (short) (narrow) %v4835_v14, 16 }
0x2365   : >> { %5029 = vrot.lane.b32.xlu0 %v4956_v28, %s6938_s18 }
0x2390   : >> { %v4548_v30 = vpop.f32.mrb[44].mxu0 }
0x2391   : >> { %v6360_v33 = vpop.f32.mrb[45].mxu0 }
0x23b4   : >> { %v4652_v61 = vpop.trf.xlu1 }
0x23b5   : >> { %6370 = vmatprep.mubr.msk.f32.mxu0 %vm647_vm8, %v4652_v61 }
0x23b8   : >> { %v4653_v23 = vpop.trf.xlu1  ;;  %v4853_v26 = vpop.trf.xlu0 }
0x23bc   : >> { %v4854_v45 = vpop.trf.xlu0 }
0x2401   : >> { %v4628_v6 = vpop.f32.mrb[44].mxu1 }
0x2402   : >> { %v4632_v35 = vmul.f32 %v4628_v6, %v4548_v30  ;;  %v6367_v38 = vpop.f32.mrb[45].mxu1 }
0x2404   : >> { %6368 = vmatprep.subr.msk.mxu0 %vm410_vm2, %v4632_v35 }
0x2405   : >> { %v4825_v39 = vpop.f32.mrb[46].mxu1  ;;  %6369 = vmatpush3.msk.msra.mxu0 %vm410_vm2, %v4632_v35 }
0x2406   : >> { %v4830_v41 = vrot.slane %v4825_v39, 7  ;;  %6371 = vmatmul.mubr.msk.f32.vlgmr.msra.gmra.mrb[46].mxu0 %vm647_vm8, %v4653_v23  ;;  %v6379_v9 = vpop.f32.mrb[47].mxu1 }
0x2407   : >> { %6382 = vmatprep.mubr.msk.f32.mxu0 %vm647_vm8, %v4853_v26 }
0x2408   : >> { %v4832_v42 = vmul.f32 %v4830_v41, %v4548_v30 }
0x240a   : >> { %v4870_v43 = vrot.slane %v4832_v42, 1 }
0x240c   : >> { %6380 = vmatprep.subr.msk.mxu0 %vm410_vm2, %v4870_v43 }
0x240d   : >> { %6381 = vmatpush3.msk.msra.mxu0 %vm410_vm2, %v4870_v43 }
0x240e   : >> { %6383 = vmatmul.mubr.msk.f32.vlgmr.msra.gmra.mrb[48].mxu0 %vm647_vm8, %v4854_v45  ;;  %6515 = vmatprep.subr.bf16.mxu0 %v6935_v5 }
0x240f   : >> { %6396 = vmatprep.mubr.msk.f32.mxu0 %vm6936_vm0, %v6937_v8 }
0x24d9   : >> { %v6372_v47 = vpop.f32.mrb[46].mxu0 }
0x24da   : >> { %v7676_v48 = vadd.f32 %v6372_v47, %v7605_v27  ;;  %v4743_v50 = vpop.f32.mrb[47].mxu0 }
0x24db   : >> { %v7679_v34 = vadd.f32 %v4743_v50, %v7608_v17 }
0x24dd   : >> { %v6513_v37 = vpack.c.bf16 %v7676_v48, %v7679_v34 }
0x24df   : >> { %6514 = vmatpush3.bf16.msra.mxu1 %v6513_v37 }
0x24e0   : >> { %6399 = vmatprep.subr.mxu1 %v6937_v8 }
0x24e1   : >> { %v6384_v51 = vpop.f32.mrb[48].mxu0 }
0x24e2   : >> { %v7685_v53 = vadd.f32 %v6384_v51, %v7614_v31  ;;  %v4945_v54 = vpop.f32.mrb[49].mxu0  ;;  %6390 = vmatmul.mubr.msk.f32.vlgmr.msra.gmra.mrb[48].mxu1 %vm255_vm1, %v4956_v28  ;;  %v5030_v31 = vpop.permute.xlu0 %5029 }
0x24e3   : >> { %v7689_v27 = vadd.f32 %v4945_v54, %v7618_v59  ;;  %6400 = vmatpush3.msk.msra.mxu1 %vm457_vm6, %v7140_v0  ;;  %6401 = vmatprep.mubr.msk.f32.mxu1 %vm6936_vm0, %v6937_v8 }
0x24e5   : >> { %v7697_v17 = vpack.c.bf16 %v7685_v53, %v7689_v27 }
0x24e7   : >> { %6517 = vmatpush3.bf16.msra.mxu0 %v7697_v17 }
0x24e8   : >> { %6518 = vmatprep.subr.bf16.mxu0 %v6935_v5 }
0x24ea   : >> { %6397 = vmatmul.mubr.msk.f32.vlgmr.msra.gmra.mrb[50].mxu0 %vm255_vm1, %v5030_v31 }
0x24eb   : >> { %6520 = vmatpush3.bf16.msra.mxu0 %v6513_v37  ;;  %6408 = vmatprep.mubr.msk.f32.mxu0 %vm6936_vm0, %v6937_v8 }
0x24ec   : >> { %6521 = vmatprep.subr.bf16.mxu0 %v6935_v5 }
0x25b5   : >> { %v7705_v59 = vpop.f32.mrb[48].mxu1 }
0x25b6   : >> { %v6391_v55 = vpop.f32.mrb[49].mxu1 }
0x25bd   : >> { %v5099_v56 = vpop.f32.mrb[50].mxu0 }
0x25be   : >> { %v5108_v57 = vrot.slane %v5099_v56, 7  ;;  %v6398_v58 = vpop.f32.mrb[51].mxu0 }
0x25c0   : >> { %v5110_v60 = vsel %vm410_vm2, %v7705_v59, %v5108_v57 }
0x25c1   : >> { %v5126_v62 = vsel %vm429_vm3, %v5110_v60, -inf  ;;  %v5111_v63 = vsel %vm412_vm4, %v5110_v60, -inf  ;;  %v5906_v30 = vmul.f32 -1.442695, %v5110_v60 }
0x25c2   : >> { %5127 = vmax.xlane.f32.xlu1 %v5126_v62  ;;  %5112 = vmax.xlane.f32.xlu0 %v5111_v63 }
0x264f   : >> { %v5128_v7 = vpop.xlane.xlu1 %5127  ;;  %v5113_v46 = vpop.xlane.xlu0 %5112 }
0x2650   : >> { %v5129_v49 = vsub.f32 %v5110_v60, %v5128_v7  ;;  %v5114_v12 = vsub.f32 %v5110_v60, %v5113_v46 }
0x2652   : >> { %v5130_v5 = vmul.f32 1.442695, %v5129_v49  ;;  %v5115_v16 = vmul.f32 1.442695, %v5114_v12 }
0x2654   : >> { %6732 = vpow2.f32 %v5130_v5 }
0x2655   : >> { %6734 = vpow2.f32 %v5115_v16 }
0x265e   : >> { %v6733_v18 = vpop.eup %6732 }
0x265f   : >> { %5133 = vrot.lane.b32.xlu1 %v6733_v18, %s6939_s19  ;;  %v6735_v1 = vpop.eup %6734 }
0x2663   : >> { %5118 = vrot.lane.b32.xlu1 %v6735_v1, %s6938_s18 }
0x26d1   : >> { %v5134_v4 = vpop.permute.xlu1 %5133 }
0x26d2   : >> { %v5136_v19 = vsel %vm423_vm5, %v5134_v4, 0.0 }
0x26d3   : >> { %5137 = vadd.xlane.f32.xlu1 %v5136_v19 }
0x26d5   : >> { %v5119_v22 = vpop.permute.xlu1 %5118 }
0x26d6   : >> { %v5121_v24 = vsel %vm423_vm5, %v5119_v22, 0.0 }
0x26d7   : >> { %5122 = vadd.xlane.f32.xlu0 %v5121_v24 }
0x2760   : >> { %v5138_v25 = vpop.xlane.xlu1 %5137 }
0x2761   : >> { %6736 = vrcp.f32 %v5138_v25 }
0x2762   : >> { %6738 = vpow2.f32 %v5906_v30 }
0x2764   : >> { %v5123_v33 = vpop.xlane.xlu0 %5122 }
0x2765   : >> { %6740 = vrcp.f32 %v5123_v33 }
0x276b   : >> { %v6737_v14 = vpop.eup %6736 }
0x276c   : >> { %v5140_v28 = vmul.f32 %v6737_v14, %v6733_v18  ;;  %v6739_v61 = vpop.eup %6738 }
0x276d   : >> { %v5144_v6 = vadd.f32 1.0, %v6739_v61 }
0x276e   : >> { %5223 = vrot.lane.b32.xlu0 %v5140_v28, %s6938_s18  ;;  %v5503_v9 = vrot.slane %v5140_v28, 1 }
0x276f   : >> { %v6741_v35 = vpop.eup %6740  ;;  %6742 = vrcp.f32 %v5144_v6 }
0x2770   : >> { %v5125_v38 = vmul.f32 %v6741_v35, %v6735_v1 }
0x2779   : >> { %v6743_v41 = vpop.eup %6742 }
0x27e0   : >> { %v5224_v23 = vpop.permute.xlu0 %5223 }
0x27e1   : >> { %v5226_v26 = vsub.f32 %v5125_v38, %v5224_v23 }
0x27e3   : >> { %v5424_v39 = vrot.slane %v5226_v26, 1  ;;  %5228 = vrot.lane.b32.xlu0 %v5226_v26, %s6938_s18 }
0x27e5   : >> { %5425 = vrot.lane.b32.xlu1 %v5424_v39, %s6938_s18 }
0x27e7   : >> { %5148 = vrot.lane.b32.xlu0 %v6743_v41, %s6940_s25 }
0x27e9   : >> { %3764 = vrot.lane.b32.xlu1 %v7565_v15, %s6941_s26 }
0x27eb   : >> { %404 = vrot.lane.b32.xlu0 %v7205_v13, %s6941_s26 }
0x27ed   : >> { %5104 = vrot.lane.b32.xlu1 %v5099_v56, %s6941_s26 }
0x27ef   : >> { %1084 = vrot.lane.b32.xlu0 %v7278_v20, %s6941_s26 }
0x27f3   : >> { %1754 = vrot.lane.b32.xlu0 %v7349_v29, %s6941_s26 }
0x27f7   : >> { %2424 = vrot.lane.b32.xlu0 %v7420_v40, %s6941_s26 }
0x27fb   : >> { %3094 = vrot.lane.b32.xlu0 %v7491_v52, %s6941_s26 }
0x27ff   : >> { %4434 = vrot.lane.b32.xlu0 %v7636_v36, %s6941_s26 }
0x2803   : >> { %5303 = vrot.lane.b32.xlu0 %v5140_v28, %s6939_s19 }
0x2807   : >> { %5504 = vrot.lane.b32.xlu0 %v5503_v9, %s6939_s19 }
0x2855   : >> { %v5229_v42 = vpop.permute.xlu0 %5228 }
0x2856   : >> { %6409 = vmatmul.mubr.msk.f32.vlgmr.msra.gmra.mrb[52].mxu0 %vm255_vm1, %v5229_v42 }
0x2857   : >> { %6523 = vmatpush3.bf16.msra.mxu0 %v7697_v17  ;;  %6420 = vmatprep.mubr.msk.f32.mxu0 %vm6936_vm0, %v6937_v8  ;;  %v5426_v13 = vpop.permute.xlu1 %5425 }
0x2859   : >> { %v5149_v20 = vpop.permute.xlu0 %5148 }
0x285a   : >> { %6402 = vmatmul.mubr.msk.f32.vlgmr.msra.gmra.mrb[50].mxu1 %vm454_vm7, %v5149_v20  ;;  %6421 = vmatmul.mubr.msk.f32.vlgmr.msra.gmra.mrb[54].mxu0 %vm255_vm1, %v5426_v13 }
0x285b   : >> { %v3765_v50 = vpop.permute.xlu1 %3764 }
0x285c   : >> { %v3767_v17 = vsel %vm255_vm1, %v7563_v32, %v3765_v50 }
0x285d   : >> { %v405_v29 = vpop.permute.xlu0 %404  ;;  %v5639_v57 = vrot.slane %v3767_v17, 3 }
0x285e   : >> { %v407_v36 = vsel %vm255_vm1, %v7203_v11, %v405_v29 }
0x285f   : >> { %v5105_v55 = vpop.permute.xlu1 %5104 }
0x2860   : >> { %v5107_v58 = vsel %vm255_vm1, %v7705_v59, %v5105_v55 }
0x2861   : >> { %v1085_v40 = vpop.permute.xlu0 %1084  ;;  %v5645_v7 = vrot.slane %v5107_v58, 1 }
0x2862   : >> { %v1087_v52 = vsel %vm255_vm1, %v7276_v3, %v1085_v40 }
0x2863   : >> { %v5627_v15 = vrot.slane %v1087_v52, 7 }
0x2865   : >> { %v5647_v43 = vsel %vm410_vm2, %v407_v36, %v5627_v15  ;;  %v1755_v45 = vpop.permute.xlu0 %1754 }
0x2866   : >> { %v1757_v8 = vsel %vm255_vm1, %v7347_v2, %v1755_v45 }
0x2867   : >> { %v5630_v47 = vrot.slane %v1757_v8, 6 }
0x2869   : >> { %v5649_v37 = vsel %vm5648_vm9, %v5647_v43, %v5630_v47  ;;  %v2425_v51 = vpop.permute.xlu0 %2424 }
0x286a   : >> { %v2427_v54 = vsel %vm255_vm1, %v7418_v10, %v2425_v51 }
0x286b   : >> { %v5633_v3 = vrot.slane %v2427_v54, 5 }
0x286d   : >> { %v5651_v11 = vsel %vm5650_vm10, %v5649_v37, %v5633_v3  ;;  %v3095_v31 = vpop.permute.xlu0 %3094 }
0x286e   : >> { %v3097_v2 = vsel %vm255_vm1, %v7489_v21, %v3095_v31 }
0x286f   : >> { %v5636_v56 = vrot.slane %v3097_v2, 4 }
0x2871   : >> { %v5652_v10 = vsel %vm457_vm6, %v5651_v11, %v5636_v56  ;;  %v4435_v60 = vpop.permute.xlu0 %4434 }
0x2872   : >> { %v4437_v32 = vsel %vm255_vm1, %v7634_v44, %v4435_v60  ;;  %v5654_v62 = vsel %vm5653_vm11, %v5652_v10, %v5639_v57 }
0x2873   : >> { %v5642_v63 = vrot.slane %v4437_v32, 2 }
0x2875   : >> { %v5656_v21 = vsel %vm5655_vm12, %v5654_v62, %v5642_v63  ;;  %v5304_v46 = vpop.permute.xlu0 %5303 }
0x2876   : >> { %v5658_v49 = vsel %vm5657_vm13, %v5656_v21, %v5645_v7  ;;  %5306 = vxpose.xlu1.b32.start.end [1/1] (short) (narrow) %v5304_v46, 16 }
0x2877   : >> { %5661 = vst.msk [vmem:[%s5659_s21] sm:$0xff] %vm5660_vm14, %v5658_v49 }
0x2879   : >> { %v5505_v59 = vpop.permute.xlu0 %5504 }
0x287a   : >> { %5507 = vxpose.xlu0.b32.start.end [1/1] (short) (narrow) %v5505_v59, 16 }
0x28f6   : >> { %v5322_v12 = vpop.trf.xlu1 }
0x28f7   : >> { %6413 = vmatprep.mubr.msk.f32.mxu1 %vm647_vm8, %v5322_v12 }
0x28fa   : >> { %v5523_v44 = vpop.trf.xlu0  ;;  %v5323_v25 = vpop.trf.xlu1 }
0x28fe   : >> { %v5524_v30 = vpop.trf.xlu0 }
0x2929   : >> { %v5298_v5 = vpop.f32.mrb[52].mxu0 }
0x292a   : >> { %v6410_v16 = vpop.f32.mrb[53].mxu0 }
0x292d   : >> { %v5495_v18 = vpop.f32.mrb[54].mxu0  ;;  %v5218_v1 = vpop.f32.mrb[50].mxu1 }
0x292e   : >> { %v5500_v4 = vrot.slane %v5495_v18, 7  ;;  %v5302_v19 = vmul.f32 %v5298_v5, %v5218_v1  ;;  %v6403_v22 = vpop.f32.mrb[51].mxu1  ;;  %v6422_v24 = vpop.f32.mrb[55].mxu0 }
0x2930   : >> { %v5502_v14 = vmul.f32 %v5500_v4, %v5218_v1  ;;  %6411 = vmatprep.subr.msk.mxu1 %vm410_vm2, %v5302_v19 }
0x2931   : >> { %6412 = vmatpush3.msk.msra.mxu1 %vm410_vm2, %v5302_v19 }
0x2932   : >> { %v5540_v28 = vrot.slane %v5502_v14, 1  ;;  %6414 = vmatmul.mubr.msk.f32.vlgmr.msra.gmra.mrb[52].mxu1 %vm647_vm8, %v5323_v25 }
0x2933   : >> { %6425 = vmatprep.mubr.msk.f32.mxu1 %vm647_vm8, %v5523_v44 }
0x2934   : >> { %6423 = vmatprep.subr.msk.mxu1 %vm410_vm2, %v5540_v28 }
0x2935   : >> { %6424 = vmatpush3.msk.msra.mxu1 %vm410_vm2, %v5540_v28 }
0x2936   : >> { %6426 = vmatmul.mubr.msk.f32.vlgmr.msra.gmra.mrb[54].mxu1 %vm647_vm8, %v5524_v30 }
0x2a05   : >> { %v6415_v33 = vpop.f32.mrb[52].mxu1  ;;  %246 = sbr.rel (!%p244_p4) target bundleno = 92 (0x5c), region = 95 }
0x2a06   : >> { %v5423_v2 = vadd.f32 %v6415_v33, %v7676_v48   ;;  %v5413_v61 = vpop.f32.mrb[53].mxu1 }
0x2a07   : >> { %v5422_v1 = vadd.f32 %v5413_v61, %v7679_v34  }
0x2a09   : >> { %v6427_v6 = vpop.f32.mrb[54].mxu1 }
0x2a0a   : >> { %v5625_v4 = vadd.f32 %v6427_v6, %v7685_v53   ;;  %v5615_v35 = vpop.f32.mrb[55].mxu1 }
0x2a0b   : >> { %v5624_v3 = vadd.f32 %v5615_v35, %v7689_v27  }
0x2a0c   : > { %6816 = shalt.err (!%p6813_p9)
}
0x2a0d   : > { %s6817_s11 = scalar_lea.hbm %s7782_s7, 256  ;;  %s6821_s19 = scalar_lea.hbm %s7837_s3, 512 }
0x2a0e   : > { %p6818_p1 = scmp.ne.s32.totalorder %s7782_s7, %s6817_s11  ;;  %p6822_p7 = scmp.lt.u32.totalorder %s7782_s7, %s7837_s3 }
0x2a0f   : > { %p6823_p13 = scmp.lt.u32.totalorder %s6821_s19, %s6817_s11  ;;  %p6825_p6 = scmp.lt.u32.totalorder %s6817_s11, %s7782_s7 }
0x2a10   : > { %p6819_p2 = pnand %p6818_p1, %p7064_p10 }
0x2a11   : > { %p6824_p4 = por %p6823_p13, %p6822_p7 }
0x2a12   : > { %p6820_p3 = pneg %p6819_p2 }
0x2a13   : > { %p6826_p8 = por %p6825_p6, %p6824_p4 }
0x2a15   : > { %p6827_p12 = pnand %p6826_p8, %p6820_p3 }
0x2a17   : > { %6830 = shalt.err (!%p6827_p12)
}
0x2a18   : > { %s6943_s21 = smov 128   ;;  %s6944_s4 = smov 8  }
0x2a19   : > { %6530 = dma.vmem_to_hbm [thread:$0]  (%p7064_p10), %s7785_s24, 256, %s7782_s7, %s5667_s10, %s6943_s21, %s6943_s21, %s6944_s4  }
0x2a1a PF: > { %s5697_s6 = sand.u32 1, %s6889_s12   ;;  %p7855_p11 = scmp.ne.s32.totalorder %s7845_s23, 0 }
0x2a1b   : > { %p7856_p0 = scmp.ge.s32.totalorder %s6909_s17, 2  ;;  %s5698_s29 = scalar_lea.sflag [#allocation5], %s5697_s6 }
0x2a1d   : > { %p6541_p5 = pnand %p7856_p0, %p7855_p11 }
0x2a1f   : > { %6884 = dma.done.wait (!%p6541_p5), %s5698_s29, 256  }
0x2a20   : > { %6886 = vsyncadd (!%p6541_p5), %s5698_s29, 4294967040  ;;  %s20_s17 = sadd.s32 1, %s6909_s17   ;;  %s7857_s12 = smov %s6893_s13 }
0x2a21   : > { %p17_p9 = scmp.ge.s32.totalorder %s20_s17, 4   ;;  %s7858_s13 = smov %s6897_s14 }
0x2a22   : > { %s7859_s14 = smov %s7073_s5  ;;  %s7860_s15 = smov %s6905_s16 }
0x2a23   : > { %s7861_s16 = smov %s7863_s28  ;;  %19 = sbr.rel (!%p17_p9) target bundleno = 7 (0x7), region = 106 }
0x2a2a   :  { %5703 = vsyncpa [#allocation4], 1 }
0x2a2b   :  { %5705 = vsyncpa [#allocation4 + $0x1], 1 }
0x2a2c   :  { %5706 = vsyncpa [#allocation7], 1 }
0x2a2d   :  { %5707 = vsyncpa [#allocation5], 1 }
0x2a2e   :  { %5709 = vsyncpa [#allocation5 + $0x1], 1 }

</bundles_post_ra>
